<compile_context>
chip_gen: v6e
topology: v6e:2x2x1
jax: 0.10.0
libtpu: 0.0.40
codegen_flags: <defaults>
</compile_context>

<pallas_src>
import functools

import jax
import jax.numpy as jnp
import numpy as np
from jax.experimental import pallas as pl
from jax.experimental.pallas import tpu as pltpu


def _lstm_proj_seq(x2d, wih, whh, b, wlin, blin, T, B):
    """LSTM over T steps + deferred linear projection, on VMEM values.

    x2d:  (T*B, F)  time-major flattened input (row index = t*B + b)
    wih:  (F, 4H)   input-to-hidden weights, pre-transposed
    whh:  (H, 4H)   hidden-to-hidden weights, pre-transposed
    b:    (1, 4H)   combined bias (b_ih + b_hh)
    wlin: (H, O)    projection weights, pre-transposed
    blin: (1, O)    projection bias
    returns (T*B, O) projected hidden states (same row order as x2d).
    """
    H = whh.shape[0]

    # One batched MXU matmul for the input contribution of ALL time steps.
    gates_x = jnp.dot(x2d, wih, preferred_element_type=jnp.float32) + b  # (T*B, 4H)

    h = jnp.zeros((B, H), jnp.float32)
    c = jnp.zeros((B, H), jnp.float32)

    # Hoisted: lane mask selecting the "g" (cell-candidate) gate block.
    lane = jax.lax.broadcasted_iota(jnp.int32, (B, 4 * H), 1)
    g_mask = (lane >= 2 * H) & (lane < 3 * H)

    hs = []
    # Fully unrolled time loop (T is small & static) -> only h @ W_hh and the
    # elementwise gate math sit on the serial recurrence critical path.
    for t in range(T):
        gates = gates_x[t * B:(t + 1) * B, :] + jnp.dot(
            h, whh, preferred_element_type=jnp.float32)          # (B, 4H)
        # Two full-vreg EUP passes + one select; PyTorch gate order i, f, g, o.
        act = jnp.where(g_mask, jnp.tanh(gates), jax.nn.sigmoid(gates))
        i_g = act[:, 0 * H:1 * H]
        f_g = act[:, 1 * H:2 * H]
        g_g = act[:, 2 * H:3 * H]
        o_g = act[:, 3 * H:4 * H]
        c = f_g * c + i_g * g_g
        h = o_g * jnp.tanh(c)
        hs.append(h)

    h_all = jnp.concatenate(hs, axis=0)                           # (T*B, H)
    # One batched projection matmul + one contiguous result.
    return jnp.dot(h_all, wlin, preferred_element_type=jnp.float32) + blin


def _lstm_ae_kernel(x_ref,
                    e_wih_ref, e_whh_ref, e_b_ref, e_wlin_ref, e_blin_ref,
                    d_wih_ref, d_whh_ref, d_b_ref, d_wlin_ref, d_blin_ref,
                    out_ref, *, T, B):
    """Fused encoder+decoder: latent sequence stays in VMEM registers."""
    latent = _lstm_proj_seq(x_ref[...],
                            e_wih_ref[...], e_whh_ref[...], e_b_ref[...],
                            e_wlin_ref[...], e_blin_ref[...], T, B)
    out_ref[...] = _lstm_proj_seq(latent,
                                  d_wih_ref[...], d_whh_ref[...], d_b_ref[...],
                                  d_wlin_ref[...], d_blin_ref[...], T, B)


def _prep_params(p):
    """Pre-transpose weights so in-kernel matmuls are plain x @ W."""
    h4 = p["w_hh"].shape[0]
    return (jnp.transpose(p["w_ih"]).astype(jnp.float32),          # (F, 4H)
            jnp.transpose(p["w_hh"]).astype(jnp.float32),          # (H, 4H)
            (p["b_ih"] + p["b_hh"]).reshape(1, h4).astype(jnp.float32),
            jnp.transpose(p["w_lin"]).astype(jnp.float32),          # (H, O)
            p["b_lin"].reshape(1, -1).astype(jnp.float32))


def lstm_autoencoder_forward(x, enc_params, dec_params):
    """LSTMAutoencoder.forward: x (B, T, n_features) -> (B, T, n_features)."""
    B, T, F = x.shape

    # Batch-first (PyTorch) -> time-major flattened (T*B, F): row = t*B + b.
    x2d = jnp.transpose(x, (1, 0, 2)).reshape(T * B, F).astype(jnp.float32)
    enc = _prep_params(enc_params)
    dec = _prep_params(dec_params)

    vmem = pl.BlockSpec(memory_space=pltpu.MemorySpace.VMEM)
    out2d = pl.pallas_call(
        functools.partial(_lstm_ae_kernel, T=T, B=B),
        out_shape=jax.ShapeDtypeStruct((T * B, F), jnp.float32),
        in_specs=[vmem] * 11,
        out_specs=vmem,
    )(x2d, *enc, *dec)

    return jnp.transpose(out2d.reshape(T, B, F), (1, 0, 2))        # (B, T, F)


# ------------------------- pure-JAX reference ------------------------------
def _ref_lstm_proj(x, p):
    B, T, F = x.shape
    H = p["w_hh"].shape[1]

    def cell(carry, x_t):
        h, c = carry
        gates = (x_t @ p["w_ih"].T + p["b_ih"]
                 + h @ p["w_hh"].T + p["b_hh"])
        i, f, g, o = jnp.split(gates, 4, axis=-1)
        i = jax.nn.sigmoid(i)
        f = jax.nn.sigmoid(f)
        g = jnp.tanh(g)
        o = jax.nn.sigmoid(o)
        c = f * c + i * g
        h = o * jnp.tanh(c)
        return (h, c), h

    h0 = jnp.zeros((B, H), jnp.float32)
    c0 = jnp.zeros((B, H), jnp.float32)
    _, hs = jax.lax.scan(cell, (h0, c0), jnp.transpose(x, (1, 0, 2)))
    hs = jnp.transpose(hs, (1, 0, 2))
    return hs @ p["w_lin"].T + p["b_lin"]


def _ref_autoencoder(x, enc_params, dec_params):
    return _ref_lstm_proj(_ref_lstm_proj(x, enc_params), dec_params)


# ------------------------- param init (deterministic) ----------------------
def init_lstm_proj_params(key, in_size, hidden_size, out_size):
    bound = 1.0 / float(np.sqrt(hidden_size))  # PyTorch LSTM/Linear default-ish
    ks = jax.random.split(key, 6)
    u = lambda k, shape: jax.random.uniform(k, shape, jnp.float32, -bound, bound)
    return dict(
        w_ih=u(ks[0], (4 * hidden_size, in_size)),
        w_hh=u(ks[1], (4 * hidden_size, hidden_size)),
        b_ih=u(ks[2], (4 * hidden_size,)),
        b_hh=u(ks[3], (4 * hidden_size,)),
        w_lin=u(ks[4], (out_size, hidden_size)),
        b_lin=u(ks[5], (out_size,)),
    )


if __name__ == "__main__":
    # Shapes consistent with LSTMAutoencoder(input_size=16, hidden_size=32,
    # latent_size=8), batch of 2 sequences of length 8.
    input_size, hidden_size, latent_size = 16, 32, 8
    batch, seq_len = 2, 8

    key = jax.random.PRNGKey(0)
    k_x, k_enc, k_dec = jax.random.split(key, 3)

    x = jax.random.normal(k_x, (batch, seq_len, input_size), jnp.float32)
    enc_params = init_lstm_proj_params(k_enc, input_size, hidden_size, latent_size)
    dec_params = init_lstm_proj_params(k_dec, latent_size, hidden_size, input_size)

    out = jax.jit(lstm_autoencoder_forward)(x, enc_params, dec_params)
    out = jax.block_until_ready(out)

    ref = _ref_autoencoder(x, enc_params, dec_params)
    assert out.shape == (batch, seq_len, input_size)
    np.testing.assert_allclose(np.asarray(out), np.asarray(ref),
                               rtol=1e-4, atol=1e-4)
    print("KERNEL_OK")
</pallas_src>

<mosaic_0001>
module attributes {stable_mosaic.version = 11 : i64} {
  func.func @_lstm_ae_kernel(%arg0: memref<16x16xf32, #tpu.memory_space<vmem>>, %arg1: memref<16x128xf32, #tpu.memory_space<vmem>>, %arg2: memref<32x128xf32, #tpu.memory_space<vmem>>, %arg3: memref<1x128xf32, #tpu.memory_space<vmem>>, %arg4: memref<32x8xf32, #tpu.memory_space<vmem>>, %arg5: memref<1x8xf32, #tpu.memory_space<vmem>>, %arg6: memref<8x128xf32, #tpu.memory_space<vmem>>, %arg7: memref<32x128xf32, #tpu.memory_space<vmem>>, %arg8: memref<1x128xf32, #tpu.memory_space<vmem>>, %arg9: memref<32x16xf32, #tpu.memory_space<vmem>>, %arg10: memref<1x16xf32, #tpu.memory_space<vmem>>, %arg11: memref<16x16xf32, #tpu.memory_space<vmem>>) attributes {dimension_semantics = [], scalar_prefetch = 0 : i64, scratch_operands = 0 : i64, tpu.core_type = #tpu.core_type<tc>} {
    %c0 = arith.constant 0 : index
    %c0_0 = arith.constant 0 : index
    %0 = vector.load %arg0[%c0, %c0_0] : memref<16x16xf32, #tpu.memory_space<vmem>>, vector<16x16xf32>
    %c0_1 = arith.constant 0 : index
    %c0_2 = arith.constant 0 : index
    %1 = vector.load %arg1[%c0_1, %c0_2] : memref<16x128xf32, #tpu.memory_space<vmem>>, vector<16x128xf32>
    %c0_3 = arith.constant 0 : index
    %c0_4 = arith.constant 0 : index
    %2 = vector.load %arg2[%c0_3, %c0_4] : memref<32x128xf32, #tpu.memory_space<vmem>>, vector<32x128xf32>
    %c0_5 = arith.constant 0 : index
    %c0_6 = arith.constant 0 : index
    %3 = vector.load %arg3[%c0_5, %c0_6] : memref<1x128xf32, #tpu.memory_space<vmem>>, vector<1x128xf32>
    %c0_7 = arith.constant 0 : index
    %c0_8 = arith.constant 0 : index
    %4 = vector.load %arg4[%c0_7, %c0_8] : memref<32x8xf32, #tpu.memory_space<vmem>>, vector<32x8xf32>
    %c0_9 = arith.constant 0 : index
    %c0_10 = arith.constant 0 : index
    %5 = vector.load %arg5[%c0_9, %c0_10] : memref<1x8xf32, #tpu.memory_space<vmem>>, vector<1x8xf32>
    %cst = arith.constant dense<0.000000e+00> : vector<16x128xf32>
    %6 = tpu.matmul %0, %1, %cst {dimension_numbers = #tpu.dot_dimension_numbers<[1], [0], [0], [1], [0, 0, 1, 1], [], []>} : vector<16x16xf32>, vector<16x128xf32>, vector<16x128xf32> -> vector<16x128xf32>
    %7 = vector.broadcast %3 : vector<1x128xf32> to vector<16x128xf32>
    %8 = arith.addf %6, %7 : vector<16x128xf32>
    %cst_11 = arith.constant 0.000000e+00 : f32
    %9 = vector.broadcast %cst_11 : f32 to vector<2x32xf32>
    %cst_12 = arith.constant 0.000000e+00 : f32
    %10 = vector.broadcast %cst_12 : f32 to vector<2x32xf32>
    %11 = tpu.iota {dimensions = array<i32: 1>} : vector<2x128xi32>
    %c64_i32 = arith.constant 64 : i32
    %12 = vector.broadcast %c64_i32 : i32 to vector<2x128xi32>
    %13 = arith.cmpi sge, %11, %12 : vector<2x128xi32>
    %c96_i32 = arith.constant 96 : i32
    %14 = vector.broadcast %c96_i32 : i32 to vector<2x128xi32>
    %15 = arith.cmpi slt, %11, %14 : vector<2x128xi32>
    %16 = arith.andi %13, %15 : vector<2x128xi1>
    %17 = vector.extract_strided_slice %8 {offsets = [0, 0], sizes = [2, 128], strides = [1, 1]} : vector<16x128xf32> to vector<2x128xf32>
    %cst_13 = arith.constant dense<0.000000e+00> : vector<2x128xf32>
    %18 = tpu.matmul %9, %2, %cst_13 {dimension_numbers = #tpu.dot_dimension_numbers<[1], [0], [0], [1], [0, 0, 1, 1], [], []>} : vector<2x32xf32>, vector<32x128xf32>, vector<2x128xf32> -> vector<2x128xf32>
    %19 = arith.addf %17, %18 : vector<2x128xf32>
    %20 = math.tanh %19 : vector<2x128xf32>
    %21 = arith.negf %19 : vector<2x128xf32>
    %22 = math.exp %21 : vector<2x128xf32>
    %cst_14 = arith.constant 1.000000e+00 : f32
    %23 = vector.broadcast %cst_14 : f32 to vector<2x128xf32>
    %24 = arith.addf %23, %22 : vector<2x128xf32>
    %25 = arith.divf %23, %24 : vector<2x128xf32>
    %26 = arith.select %16, %20, %25 : vector<2x128xi1>, vector<2x128xf32>
    %27 = vector.extract_strided_slice %26 {offsets = [0, 0], sizes = [2, 32], strides = [1, 1]} : vector<2x128xf32> to vector<2x32xf32>
    %28 = vector.extract_strided_slice %26 {offsets = [0, 32], sizes = [2, 32], strides = [1, 1]} : vector<2x128xf32> to vector<2x32xf32>
    %29 = vector.extract_strided_slice %26 {offsets = [0, 64], sizes = [2, 32], strides = [1, 1]} : vector<2x128xf32> to vector<2x32xf32>
    %30 = vector.extract_strided_slice %26 {offsets = [0, 96], sizes = [2, 32], strides = [1, 1]} : vector<2x128xf32> to vector<2x32xf32>
    %31 = arith.mulf %28, %10 : vector<2x32xf32>
    %32 = arith.mulf %27, %29 : vector<2x32xf32>
    %33 = arith.addf %31, %32 : vector<2x32xf32>
    %34 = math.tanh %33 : vector<2x32xf32>
    %35 = arith.mulf %30, %34 : vector<2x32xf32>
    %36 = vector.extract_strided_slice %8 {offsets = [2, 0], sizes = [2, 128], strides = [1, 1]} : vector<16x128xf32> to vector<2x128xf32>
    %cst_15 = arith.constant dense<0.000000e+00> : vector<2x128xf32>
    %37 = tpu.matmul %35, %2, %cst_15 {dimension_numbers = #tpu.dot_dimension_numbers<[1], [0], [0], [1], [0, 0, 1, 1], [], []>} : vector<2x32xf32>, vector<32x128xf32>, vector<2x128xf32> -> vector<2x128xf32>
    %38 = arith.addf %36, %37 : vector<2x128xf32>
    %39 = math.tanh %38 : vector<2x128xf32>
    %40 = arith.negf %38 : vector<2x128xf32>
    %41 = math.exp %40 : vector<2x128xf32>
    %cst_16 = arith.constant 1.000000e+00 : f32
    %42 = vector.broadcast %cst_16 : f32 to vector<2x128xf32>
    %43 = arith.addf %42, %41 : vector<2x128xf32>
    %44 = arith.divf %42, %43 : vector<2x128xf32>
    %45 = arith.select %16, %39, %44 : vector<2x128xi1>, vector<2x128xf32>
    %46 = vector.extract_strided_slice %45 {offsets = [0, 0], sizes = [2, 32], strides = [1, 1]} : vector<2x128xf32> to vector<2x32xf32>
    %47 = vector.extract_strided_slice %45 {offsets = [0, 32], sizes = [2, 32], strides = [1, 1]} : vector<2x128xf32> to vector<2x32xf32>
    %48 = vector.extract_strided_slice %45 {offsets = [0, 64], sizes = [2, 32], strides = [1, 1]} : vector<2x128xf32> to vector<2x32xf32>
    %49 = vector.extract_strided_slice %45 {offsets = [0, 96], sizes = [2, 32], strides = [1, 1]} : vector<2x128xf32> to vector<2x32xf32>
    %50 = arith.mulf %47, %33 : vector<2x32xf32>
    %51 = arith.mulf %46, %48 : vector<2x32xf32>
    %52 = arith.addf %50, %51 : vector<2x32xf32>
    %53 = math.tanh %52 : vector<2x32xf32>
    %54 = arith.mulf %49, %53 : vector<2x32xf32>
    %55 = vector.extract_strided_slice %8 {offsets = [4, 0], sizes = [2, 128], strides = [1, 1]} : vector<16x128xf32> to vector<2x128xf32>
    %cst_17 = arith.constant dense<0.000000e+00> : vector<2x128xf32>
    %56 = tpu.matmul %54, %2, %cst_17 {dimension_numbers = #tpu.dot_dimension_numbers<[1], [0], [0], [1], [0, 0, 1, 1], [], []>} : vector<2x32xf32>, vector<32x128xf32>, vector<2x128xf32> -> vector<2x128xf32>
    %57 = arith.addf %55, %56 : vector<2x128xf32>
    %58 = math.tanh %57 : vector<2x128xf32>
    %59 = arith.negf %57 : vector<2x128xf32>
    %60 = math.exp %59 : vector<2x128xf32>
    %cst_18 = arith.constant 1.000000e+00 : f32
    %61 = vector.broadcast %cst_18 : f32 to vector<2x128xf32>
    %62 = arith.addf %61, %60 : vector<2x128xf32>
    %63 = arith.divf %61, %62 : vector<2x128xf32>
    %64 = arith.select %16, %58, %63 : vector<2x128xi1>, vector<2x128xf32>
    %65 = vector.extract_strided_slice %64 {offsets = [0, 0], sizes = [2, 32], strides = [1, 1]} : vector<2x128xf32> to vector<2x32xf32>
    %66 = vector.extract_strided_slice %64 {offsets = [0, 32], sizes = [2, 32], strides = [1, 1]} : vector<2x128xf32> to vector<2x32xf32>
    %67 = vector.extract_strided_slice %64 {offsets = [0, 64], sizes = [2, 32], strides = [1, 1]} : vector<2x128xf32> to vector<2x32xf32>
    %68 = vector.extract_strided_slice %64 {offsets = [0, 96], sizes = [2, 32], strides = [1, 1]} : vector<2x128xf32> to vector<2x32xf32>
    %69 = arith.mulf %66, %52 : vector<2x32xf32>
    %70 = arith.mulf %65, %67 : vector<2x32xf32>
    %71 = arith.addf %69, %70 : vector<2x32xf32>
    %72 = math.tanh %71 : vector<2x32xf32>
    %73 = arith.mulf %68, %72 : vector<2x32xf32>
    %74 = vector.extract_strided_slice %8 {offsets = [6, 0], sizes = [2, 128], strides = [1, 1]} : vector<16x128xf32> to vector<2x128xf32>
    %cst_19 = arith.constant dense<0.000000e+00> : vector<2x128xf32>
    %75 = tpu.matmul %73, %2, %cst_19 {dimension_numbers = #tpu.dot_dimension_numbers<[1], [0], [0], [1], [0, 0, 1, 1], [], []>} : vector<2x32xf32>, vector<32x128xf32>, vector<2x128xf32> -> vector<2x128xf32>
    %76 = arith.addf %74, %75 : vector<2x128xf32>
    %77 = math.tanh %76 : vector<2x128xf32>
    %78 = arith.negf %76 : vector<2x128xf32>
    %79 = math.exp %78 : vector<2x128xf32>
    %cst_20 = arith.constant 1.000000e+00 : f32
    %80 = vector.broadcast %cst_20 : f32 to vector<2x128xf32>
    %81 = arith.addf %80, %79 : vector<2x128xf32>
    %82 = arith.divf %80, %81 : vector<2x128xf32>
    %83 = arith.select %16, %77, %82 : vector<2x128xi1>, vector<2x128xf32>
    %84 = vector.extract_strided_slice %83 {offsets = [0, 0], sizes = [2, 32], strides = [1, 1]} : vector<2x128xf32> to vector<2x32xf32>
    %85 = vector.extract_strided_slice %83 {offsets = [0, 32], sizes = [2, 32], strides = [1, 1]} : vector<2x128xf32> to vector<2x32xf32>
    %86 = vector.extract_strided_slice %83 {offsets = [0, 64], sizes = [2, 32], strides = [1, 1]} : vector<2x128xf32> to vector<2x32xf32>
    %87 = vector.extract_strided_slice %83 {offsets = [0, 96], sizes = [2, 32], strides = [1, 1]} : vector<2x128xf32> to vector<2x32xf32>
    %88 = arith.mulf %85, %71 : vector<2x32xf32>
    %89 = arith.mulf %84, %86 : vector<2x32xf32>
    %90 = arith.addf %88, %89 : vector<2x32xf32>
    %91 = math.tanh %90 : vector<2x32xf32>
    %92 = arith.mulf %87, %91 : vector<2x32xf32>
    %93 = vector.extract_strided_slice %8 {offsets = [8, 0], sizes = [2, 128], strides = [1, 1]} : vector<16x128xf32> to vector<2x128xf32>
    %cst_21 = arith.constant dense<0.000000e+00> : vector<2x128xf32>
    %94 = tpu.matmul %92, %2, %cst_21 {dimension_numbers = #tpu.dot_dimension_numbers<[1], [0], [0], [1], [0, 0, 1, 1], [], []>} : vector<2x32xf32>, vector<32x128xf32>, vector<2x128xf32> -> vector<2x128xf32>
    %95 = arith.addf %93, %94 : vector<2x128xf32>
    %96 = math.tanh %95 : vector<2x128xf32>
    %97 = arith.negf %95 : vector<2x128xf32>
    %98 = math.exp %97 : vector<2x128xf32>
    %cst_22 = arith.constant 1.000000e+00 : f32
    %99 = vector.broadcast %cst_22 : f32 to vector<2x128xf32>
    %100 = arith.addf %99, %98 : vector<2x128xf32>
    %101 = arith.divf %99, %100 : vector<2x128xf32>
    %102 = arith.select %16, %96, %101 : vector<2x128xi1>, vector<2x128xf32>
    %103 = vector.extract_strided_slice %102 {offsets = [0, 0], sizes = [2, 32], strides = [1, 1]} : vector<2x128xf32> to vector<2x32xf32>
    %104 = vector.extract_strided_slice %102 {offsets = [0, 32], sizes = [2, 32], strides = [1, 1]} : vector<2x128xf32> to vector<2x32xf32>
    %105 = vector.extract_strided_slice %102 {offsets = [0, 64], sizes = [2, 32], strides = [1, 1]} : vector<2x128xf32> to vector<2x32xf32>
    %106 = vector.extract_strided_slice %102 {offsets = [0, 96], sizes = [2, 32], strides = [1, 1]} : vector<2x128xf32> to vector<2x32xf32>
    %107 = arith.mulf %104, %90 : vector<2x32xf32>
    %108 = arith.mulf %103, %105 : vector<2x32xf32>
    %109 = arith.addf %107, %108 : vector<2x32xf32>
    %110 = math.tanh %109 : vector<2x32xf32>
    %111 = arith.mulf %106, %110 : vector<2x32xf32>
    %112 = vector.extract_strided_slice %8 {offsets = [10, 0], sizes = [2, 128], strides = [1, 1]} : vector<16x128xf32> to vector<2x128xf32>
    %cst_23 = arith.constant dense<0.000000e+00> : vector<2x128xf32>
    %113 = tpu.matmul %111, %2, %cst_23 {dimension_numbers = #tpu.dot_dimension_numbers<[1], [0], [0], [1], [0, 0, 1, 1], [], []>} : vector<2x32xf32>, vector<32x128xf32>, vector<2x128xf32> -> vector<2x128xf32>
    %114 = arith.addf %112, %113 : vector<2x128xf32>
    %115 = math.tanh %114 : vector<2x128xf32>
    %116 = arith.negf %114 : vector<2x128xf32>
    %117 = math.exp %116 : vector<2x128xf32>
    %cst_24 = arith.constant 1.000000e+00 : f32
    %118 = vector.broadcast %cst_24 : f32 to vector<2x128xf32>
    %119 = arith.addf %118, %117 : vector<2x128xf32>
    %120 = arith.divf %118, %119 : vector<2x128xf32>
    %121 = arith.select %16, %115, %120 : vector<2x128xi1>, vector<2x128xf32>
    %122 = vector.extract_strided_slice %121 {offsets = [0, 0], sizes = [2, 32], strides = [1, 1]} : vector<2x128xf32> to vector<2x32xf32>
    %123 = vector.extract_strided_slice %121 {offsets = [0, 32], sizes = [2, 32], strides = [1, 1]} : vector<2x128xf32> to vector<2x32xf32>
    %124 = vector.extract_strided_slice %121 {offsets = [0, 64], sizes = [2, 32], strides = [1, 1]} : vector<2x128xf32> to vector<2x32xf32>
    %125 = vector.extract_strided_slice %121 {offsets = [0, 96], sizes = [2, 32], strides = [1, 1]} : vector<2x128xf32> to vector<2x32xf32>
    %126 = arith.mulf %123, %109 : vector<2x32xf32>
    %127 = arith.mulf %122, %124 : vector<2x32xf32>
    %128 = arith.addf %126, %127 : vector<2x32xf32>
    %129 = math.tanh %128 : vector<2x32xf32>
    %130 = arith.mulf %125, %129 : vector<2x32xf32>
    %131 = vector.extract_strided_slice %8 {offsets = [12, 0], sizes = [2, 128], strides = [1, 1]} : vector<16x128xf32> to vector<2x128xf32>
    %cst_25 = arith.constant dense<0.000000e+00> : vector<2x128xf32>
    %132 = tpu.matmul %130, %2, %cst_25 {dimension_numbers = #tpu.dot_dimension_numbers<[1], [0], [0], [1], [0, 0, 1, 1], [], []>} : vector<2x32xf32>, vector<32x128xf32>, vector<2x128xf32> -> vector<2x128xf32>
    %133 = arith.addf %131, %132 : vector<2x128xf32>
    %134 = math.tanh %133 : vector<2x128xf32>
    %135 = arith.negf %133 : vector<2x128xf32>
    %136 = math.exp %135 : vector<2x128xf32>
    %cst_26 = arith.constant 1.000000e+00 : f32
    %137 = vector.broadcast %cst_26 : f32 to vector<2x128xf32>
    %138 = arith.addf %137, %136 : vector<2x128xf32>
    %139 = arith.divf %137, %138 : vector<2x128xf32>
    %140 = arith.select %16, %134, %139 : vector<2x128xi1>, vector<2x128xf32>
    %141 = vector.extract_strided_slice %140 {offsets = [0, 0], sizes = [2, 32], strides = [1, 1]} : vector<2x128xf32> to vector<2x32xf32>
    %142 = vector.extract_strided_slice %140 {offsets = [0, 32], sizes = [2, 32], strides = [1, 1]} : vector<2x128xf32> to vector<2x32xf32>
    %143 = vector.extract_strided_slice %140 {offsets = [0, 64], sizes = [2, 32], strides = [1, 1]} : vector<2x128xf32> to vector<2x32xf32>
    %144 = vector.extract_strided_slice %140 {offsets = [0, 96], sizes = [2, 32], strides = [1, 1]} : vector<2x128xf32> to vector<2x32xf32>
    %145 = arith.mulf %142, %128 : vector<2x32xf32>
    %146 = arith.mulf %141, %143 : vector<2x32xf32>
    %147 = arith.addf %145, %146 : vector<2x32xf32>
    %148 = math.tanh %147 : vector<2x32xf32>
    %149 = arith.mulf %144, %148 : vector<2x32xf32>
    %150 = vector.extract_strided_slice %8 {offsets = [14, 0], sizes = [2, 128], strides = [1, 1]} : vector<16x128xf32> to vector<2x128xf32>
    %cst_27 = arith.constant dense<0.000000e+00> : vector<2x128xf32>
    %151 = tpu.matmul %149, %2, %cst_27 {dimension_numbers = #tpu.dot_dimension_numbers<[1], [0], [0], [1], [0, 0, 1, 1], [], []>} : vector<2x32xf32>, vector<32x128xf32>, vector<2x128xf32> -> vector<2x128xf32>
    %152 = arith.addf %150, %151 : vector<2x128xf32>
    %153 = math.tanh %152 : vector<2x128xf32>
    %154 = arith.negf %152 : vector<2x128xf32>
    %155 = math.exp %154 : vector<2x128xf32>
    %cst_28 = arith.constant 1.000000e+00 : f32
    %156 = vector.broadcast %cst_28 : f32 to vector<2x128xf32>
    %157 = arith.addf %156, %155 : vector<2x128xf32>
    %158 = arith.divf %156, %157 : vector<2x128xf32>
    %159 = arith.select %16, %153, %158 : vector<2x128xi1>, vector<2x128xf32>
    %160 = vector.extract_strided_slice %159 {offsets = [0, 0], sizes = [2, 32], strides = [1, 1]} : vector<2x128xf32> to vector<2x32xf32>
    %161 = vector.extract_strided_slice %159 {offsets = [0, 32], sizes = [2, 32], strides = [1, 1]} : vector<2x128xf32> to vector<2x32xf32>
    %162 = vector.extract_strided_slice %159 {offsets = [0, 64], sizes = [2, 32], strides = [1, 1]} : vector<2x128xf32> to vector<2x32xf32>
    %163 = vector.extract_strided_slice %159 {offsets = [0, 96], sizes = [2, 32], strides = [1, 1]} : vector<2x128xf32> to vector<2x32xf32>
    %164 = arith.mulf %161, %147 : vector<2x32xf32>
    %165 = arith.mulf %160, %162 : vector<2x32xf32>
    %166 = arith.addf %164, %165 : vector<2x32xf32>
    %167 = math.tanh %166 : vector<2x32xf32>
    %168 = arith.mulf %163, %167 : vector<2x32xf32>
    %169 = tpu.concatenate %35, %54, %73, %92, %111, %130, %149, %168 in 0 : vector<2x32xf32>, vector<2x32xf32>, vector<2x32xf32>, vector<2x32xf32>, vector<2x32xf32>, vector<2x32xf32>, vector<2x32xf32>, vector<2x32xf32> -> vector<16x32xf32>
    %cst_29 = arith.constant dense<0.000000e+00> : vector<16x8xf32>
    %170 = tpu.matmul %169, %4, %cst_29 {dimension_numbers = #tpu.dot_dimension_numbers<[1], [0], [0], [1], [0, 0, 1, 1], [], []>} : vector<16x32xf32>, vector<32x8xf32>, vector<16x8xf32> -> vector<16x8xf32>
    %171 = vector.broadcast %5 : vector<1x8xf32> to vector<16x8xf32>
    %172 = arith.addf %170, %171 : vector<16x8xf32>
    %c0_30 = arith.constant 0 : index
    %c0_31 = arith.constant 0 : index
    %173 = vector.load %arg6[%c0_30, %c0_31] : memref<8x128xf32, #tpu.memory_space<vmem>>, vector<8x128xf32>
    %c0_32 = arith.constant 0 : index
    %c0_33 = arith.constant 0 : index
    %174 = vector.load %arg7[%c0_32, %c0_33] : memref<32x128xf32, #tpu.memory_space<vmem>>, vector<32x128xf32>
    %c0_34 = arith.constant 0 : index
    %c0_35 = arith.constant 0 : index
    %175 = vector.load %arg8[%c0_34, %c0_35] : memref<1x128xf32, #tpu.memory_space<vmem>>, vector<1x128xf32>
    %c0_36 = arith.constant 0 : index
    %c0_37 = arith.constant 0 : index
    %176 = vector.load %arg9[%c0_36, %c0_37] : memref<32x16xf32, #tpu.memory_space<vmem>>, vector<32x16xf32>
    %c0_38 = arith.constant 0 : index
    %c0_39 = arith.constant 0 : index
    %177 = vector.load %arg10[%c0_38, %c0_39] : memref<1x16xf32, #tpu.memory_space<vmem>>, vector<1x16xf32>
    %cst_40 = arith.constant dense<0.000000e+00> : vector<16x128xf32>
    %178 = tpu.matmul %172, %173, %cst_40 {dimension_numbers = #tpu.dot_dimension_numbers<[1], [0], [0], [1], [0, 0, 1, 1], [], []>} : vector<16x8xf32>, vector<8x128xf32>, vector<16x128xf32> -> vector<16x128xf32>
    %179 = vector.broadcast %175 : vector<1x128xf32> to vector<16x128xf32>
    %180 = arith.addf %178, %179 : vector<16x128xf32>
    %cst_41 = arith.constant 0.000000e+00 : f32
    %181 = vector.broadcast %cst_41 : f32 to vector<2x32xf32>
    %cst_42 = arith.constant 0.000000e+00 : f32
    %182 = vector.broadcast %cst_42 : f32 to vector<2x32xf32>
    %183 = tpu.iota {dimensions = array<i32: 1>} : vector<2x128xi32>
    %c64_i32_43 = arith.constant 64 : i32
    %184 = vector.broadcast %c64_i32_43 : i32 to vector<2x128xi32>
    %185 = arith.cmpi sge, %183, %184 : vector<2x128xi32>
    %c96_i32_44 = arith.constant 96 : i32
    %186 = vector.broadcast %c96_i32_44 : i32 to vector<2x128xi32>
    %187 = arith.cmpi slt, %183, %186 : vector<2x128xi32>
    %188 = arith.andi %185, %187 : vector<2x128xi1>
    %189 = vector.extract_strided_slice %180 {offsets = [0, 0], sizes = [2, 128], strides = [1, 1]} : vector<16x128xf32> to vector<2x128xf32>
    %cst_45 = arith.constant dense<0.000000e+00> : vector<2x128xf32>
    %190 = tpu.matmul %181, %174, %cst_45 {dimension_numbers = #tpu.dot_dimension_numbers<[1], [0], [0], [1], [0, 0, 1, 1], [], []>} : vector<2x32xf32>, vector<32x128xf32>, vector<2x128xf32> -> vector<2x128xf32>
    %191 = arith.addf %189, %190 : vector<2x128xf32>
    %192 = math.tanh %191 : vector<2x128xf32>
    %193 = arith.negf %191 : vector<2x128xf32>
    %194 = math.exp %193 : vector<2x128xf32>
    %cst_46 = arith.constant 1.000000e+00 : f32
    %195 = vector.broadcast %cst_46 : f32 to vector<2x128xf32>
    %196 = arith.addf %195, %194 : vector<2x128xf32>
    %197 = arith.divf %195, %196 : vector<2x128xf32>
    %198 = arith.select %188, %192, %197 : vector<2x128xi1>, vector<2x128xf32>
    %199 = vector.extract_strided_slice %198 {offsets = [0, 0], sizes = [2, 32], strides = [1, 1]} : vector<2x128xf32> to vector<2x32xf32>
    %200 = vector.extract_strided_slice %198 {offsets = [0, 32], sizes = [2, 32], strides = [1, 1]} : vector<2x128xf32> to vector<2x32xf32>
    %201 = vector.extract_strided_slice %198 {offsets = [0, 64], sizes = [2, 32], strides = [1, 1]} : vector<2x128xf32> to vector<2x32xf32>
    %202 = vector.extract_strided_slice %198 {offsets = [0, 96], sizes = [2, 32], strides = [1, 1]} : vector<2x128xf32> to vector<2x32xf32>
    %203 = arith.mulf %200, %182 : vector<2x32xf32>
    %204 = arith.mulf %199, %201 : vector<2x32xf32>
    %205 = arith.addf %203, %204 : vector<2x32xf32>
    %206 = math.tanh %205 : vector<2x32xf32>
    %207 = arith.mulf %202, %206 : vector<2x32xf32>
    %208 = vector.extract_strided_slice %180 {offsets = [2, 0], sizes = [2, 128], strides = [1, 1]} : vector<16x128xf32> to vector<2x128xf32>
    %cst_47 = arith.constant dense<0.000000e+00> : vector<2x128xf32>
    %209 = tpu.matmul %207, %174, %cst_47 {dimension_numbers = #tpu.dot_dimension_numbers<[1], [0], [0], [1], [0, 0, 1, 1], [], []>} : vector<2x32xf32>, vector<32x128xf32>, vector<2x128xf32> -> vector<2x128xf32>
    %210 = arith.addf %208, %209 : vector<2x128xf32>
    %211 = math.tanh %210 : vector<2x128xf32>
    %212 = arith.negf %210 : vector<2x128xf32>
    %213 = math.exp %212 : vector<2x128xf32>
    %cst_48 = arith.constant 1.000000e+00 : f32
    %214 = vector.broadcast %cst_48 : f32 to vector<2x128xf32>
    %215 = arith.addf %214, %213 : vector<2x128xf32>
    %216 = arith.divf %214, %215 : vector<2x128xf32>
    %217 = arith.select %188, %211, %216 : vector<2x128xi1>, vector<2x128xf32>
    %218 = vector.extract_strided_slice %217 {offsets = [0, 0], sizes = [2, 32], strides = [1, 1]} : vector<2x128xf32> to vector<2x32xf32>
    %219 = vector.extract_strided_slice %217 {offsets = [0, 32], sizes = [2, 32], strides = [1, 1]} : vector<2x128xf32> to vector<2x32xf32>
    %220 = vector.extract_strided_slice %217 {offsets = [0, 64], sizes = [2, 32], strides = [1, 1]} : vector<2x128xf32> to vector<2x32xf32>
    %221 = vector.extract_strided_slice %217 {offsets = [0, 96], sizes = [2, 32], strides = [1, 1]} : vector<2x128xf32> to vector<2x32xf32>
    %222 = arith.mulf %219, %205 : vector<2x32xf32>
    %223 = arith.mulf %218, %220 : vector<2x32xf32>
    %224 = arith.addf %222, %223 : vector<2x32xf32>
    %225 = math.tanh %224 : vector<2x32xf32>
    %226 = arith.mulf %221, %225 : vector<2x32xf32>
    %227 = vector.extract_strided_slice %180 {offsets = [4, 0], sizes = [2, 128], strides = [1, 1]} : vector<16x128xf32> to vector<2x128xf32>
    %cst_49 = arith.constant dense<0.000000e+00> : vector<2x128xf32>
    %228 = tpu.matmul %226, %174, %cst_49 {dimension_numbers = #tpu.dot_dimension_numbers<[1], [0], [0], [1], [0, 0, 1, 1], [], []>} : vector<2x32xf32>, vector<32x128xf32>, vector<2x128xf32> -> vector<2x128xf32>
    %229 = arith.addf %227, %228 : vector<2x128xf32>
    %230 = math.tanh %229 : vector<2x128xf32>
    %231 = arith.negf %229 : vector<2x128xf32>
    %232 = math.exp %231 : vector<2x128xf32>
    %cst_50 = arith.constant 1.000000e+00 : f32
    %233 = vector.broadcast %cst_50 : f32 to vector<2x128xf32>
    %234 = arith.addf %233, %232 : vector<2x128xf32>
    %235 = arith.divf %233, %234 : vector<2x128xf32>
    %236 = arith.select %188, %230, %235 : vector<2x128xi1>, vector<2x128xf32>
    %237 = vector.extract_strided_slice %236 {offsets = [0, 0], sizes = [2, 32], strides = [1, 1]} : vector<2x128xf32> to vector<2x32xf32>
    %238 = vector.extract_strided_slice %236 {offsets = [0, 32], sizes = [2, 32], strides = [1, 1]} : vector<2x128xf32> to vector<2x32xf32>
    %239 = vector.extract_strided_slice %236 {offsets = [0, 64], sizes = [2, 32], strides = [1, 1]} : vector<2x128xf32> to vector<2x32xf32>
    %240 = vector.extract_strided_slice %236 {offsets = [0, 96], sizes = [2, 32], strides = [1, 1]} : vector<2x128xf32> to vector<2x32xf32>
    %241 = arith.mulf %238, %224 : vector<2x32xf32>
    %242 = arith.mulf %237, %239 : vector<2x32xf32>
    %243 = arith.addf %241, %242 : vector<2x32xf32>
    %244 = math.tanh %243 : vector<2x32xf32>
    %245 = arith.mulf %240, %244 : vector<2x32xf32>
    %246 = vector.extract_strided_slice %180 {offsets = [6, 0], sizes = [2, 128], strides = [1, 1]} : vector<16x128xf32> to vector<2x128xf32>
    %cst_51 = arith.constant dense<0.000000e+00> : vector<2x128xf32>
    %247 = tpu.matmul %245, %174, %cst_51 {dimension_numbers = #tpu.dot_dimension_numbers<[1], [0], [0], [1], [0, 0, 1, 1], [], []>} : vector<2x32xf32>, vector<32x128xf32>, vector<2x128xf32> -> vector<2x128xf32>
    %248 = arith.addf %246, %247 : vector<2x128xf32>
    %249 = math.tanh %248 : vector<2x128xf32>
    %250 = arith.negf %248 : vector<2x128xf32>
    %251 = math.exp %250 : vector<2x128xf32>
    %cst_52 = arith.constant 1.000000e+00 : f32
    %252 = vector.broadcast %cst_52 : f32 to vector<2x128xf32>
    %253 = arith.addf %252, %251 : vector<2x128xf32>
    %254 = arith.divf %252, %253 : vector<2x128xf32>
    %255 = arith.select %188, %249, %254 : vector<2x128xi1>, vector<2x128xf32>
    %256 = vector.extract_strided_slice %255 {offsets = [0, 0], sizes = [2, 32], strides = [1, 1]} : vector<2x128xf32> to vector<2x32xf32>
    %257 = vector.extract_strided_slice %255 {offsets = [0, 32], sizes = [2, 32], strides = [1, 1]} : vector<2x128xf32> to vector<2x32xf32>
    %258 = vector.extract_strided_slice %255 {offsets = [0, 64], sizes = [2, 32], strides = [1, 1]} : vector<2x128xf32> to vector<2x32xf32>
    %259 = vector.extract_strided_slice %255 {offsets = [0, 96], sizes = [2, 32], strides = [1, 1]} : vector<2x128xf32> to vector<2x32xf32>
    %260 = arith.mulf %257, %243 : vector<2x32xf32>
    %261 = arith.mulf %256, %258 : vector<2x32xf32>
    %262 = arith.addf %260, %261 : vector<2x32xf32>
    %263 = math.tanh %262 : vector<2x32xf32>
    %264 = arith.mulf %259, %263 : vector<2x32xf32>
    %265 = vector.extract_strided_slice %180 {offsets = [8, 0], sizes = [2, 128], strides = [1, 1]} : vector<16x128xf32> to vector<2x128xf32>
    %cst_53 = arith.constant dense<0.000000e+00> : vector<2x128xf32>
    %266 = tpu.matmul %264, %174, %cst_53 {dimension_numbers = #tpu.dot_dimension_numbers<[1], [0], [0], [1], [0, 0, 1, 1], [], []>} : vector<2x32xf32>, vector<32x128xf32>, vector<2x128xf32> -> vector<2x128xf32>
    %267 = arith.addf %265, %266 : vector<2x128xf32>
    %268 = math.tanh %267 : vector<2x128xf32>
    %269 = arith.negf %267 : vector<2x128xf32>
    %270 = math.exp %269 : vector<2x128xf32>
    %cst_54 = arith.constant 1.000000e+00 : f32
    %271 = vector.broadcast %cst_54 : f32 to vector<2x128xf32>
    %272 = arith.addf %271, %270 : vector<2x128xf32>
    %273 = arith.divf %271, %272 : vector<2x128xf32>
    %274 = arith.select %188, %268, %273 : vector<2x128xi1>, vector<2x128xf32>
    %275 = vector.extract_strided_slice %274 {offsets = [0, 0], sizes = [2, 32], strides = [1, 1]} : vector<2x128xf32> to vector<2x32xf32>
    %276 = vector.extract_strided_slice %274 {offsets = [0, 32], sizes = [2, 32], strides = [1, 1]} : vector<2x128xf32> to vector<2x32xf32>
    %277 = vector.extract_strided_slice %274 {offsets = [0, 64], sizes = [2, 32], strides = [1, 1]} : vector<2x128xf32> to vector<2x32xf32>
    %278 = vector.extract_strided_slice %274 {offsets = [0, 96], sizes = [2, 32], strides = [1, 1]} : vector<2x128xf32> to vector<2x32xf32>
    %279 = arith.mulf %276, %262 : vector<2x32xf32>
    %280 = arith.mulf %275, %277 : vector<2x32xf32>
    %281 = arith.addf %279, %280 : vector<2x32xf32>
    %282 = math.tanh %281 : vector<2x32xf32>
    %283 = arith.mulf %278, %282 : vector<2x32xf32>
    %284 = vector.extract_strided_slice %180 {offsets = [10, 0], sizes = [2, 128], strides = [1, 1]} : vector<16x128xf32> to vector<2x128xf32>
    %cst_55 = arith.constant dense<0.000000e+00> : vector<2x128xf32>
    %285 = tpu.matmul %283, %174, %cst_55 {dimension_numbers = #tpu.dot_dimension_numbers<[1], [0], [0], [1], [0, 0, 1, 1], [], []>} : vector<2x32xf32>, vector<32x128xf32>, vector<2x128xf32> -> vector<2x128xf32>
    %286 = arith.addf %284, %285 : vector<2x128xf32>
    %287 = math.tanh %286 : vector<2x128xf32>
    %288 = arith.negf %286 : vector<2x128xf32>
    %289 = math.exp %288 : vector<2x128xf32>
    %cst_56 = arith.constant 1.000000e+00 : f32
    %290 = vector.broadcast %cst_56 : f32 to vector<2x128xf32>
    %291 = arith.addf %290, %289 : vector<2x128xf32>
    %292 = arith.divf %290, %291 : vector<2x128xf32>
    %293 = arith.select %188, %287, %292 : vector<2x128xi1>, vector<2x128xf32>
    %294 = vector.extract_strided_slice %293 {offsets = [0, 0], sizes = [2, 32], strides = [1, 1]} : vector<2x128xf32> to vector<2x32xf32>
    %295 = vector.extract_strided_slice %293 {offsets = [0, 32], sizes = [2, 32], strides = [1, 1]} : vector<2x128xf32> to vector<2x32xf32>
    %296 = vector.extract_strided_slice %293 {offsets = [0, 64], sizes = [2, 32], strides = [1, 1]} : vector<2x128xf32> to vector<2x32xf32>
    %297 = vector.extract_strided_slice %293 {offsets = [0, 96], sizes = [2, 32], strides = [1, 1]} : vector<2x128xf32> to vector<2x32xf32>
    %298 = arith.mulf %295, %281 : vector<2x32xf32>
    %299 = arith.mulf %294, %296 : vector<2x32xf32>
    %300 = arith.addf %298, %299 : vector<2x32xf32>
    %301 = math.tanh %300 : vector<2x32xf32>
    %302 = arith.mulf %297, %301 : vector<2x32xf32>
    %303 = vector.extract_strided_slice %180 {offsets = [12, 0], sizes = [2, 128], strides = [1, 1]} : vector<16x128xf32> to vector<2x128xf32>
    %cst_57 = arith.constant dense<0.000000e+00> : vector<2x128xf32>
    %304 = tpu.matmul %302, %174, %cst_57 {dimension_numbers = #tpu.dot_dimension_numbers<[1], [0], [0], [1], [0, 0, 1, 1], [], []>} : vector<2x32xf32>, vector<32x128xf32>, vector<2x128xf32> -> vector<2x128xf32>
    %305 = arith.addf %303, %304 : vector<2x128xf32>
    %306 = math.tanh %305 : vector<2x128xf32>
    %307 = arith.negf %305 : vector<2x128xf32>
    %308 = math.exp %307 : vector<2x128xf32>
    %cst_58 = arith.constant 1.000000e+00 : f32
    %309 = vector.broadcast %cst_58 : f32 to vector<2x128xf32>
    %310 = arith.addf %309, %308 : vector<2x128xf32>
    %311 = arith.divf %309, %310 : vector<2x128xf32>
    %312 = arith.select %188, %306, %311 : vector<2x128xi1>, vector<2x128xf32>
    %313 = vector.extract_strided_slice %312 {offsets = [0, 0], sizes = [2, 32], strides = [1, 1]} : vector<2x128xf32> to vector<2x32xf32>
    %314 = vector.extract_strided_slice %312 {offsets = [0, 32], sizes = [2, 32], strides = [1, 1]} : vector<2x128xf32> to vector<2x32xf32>
    %315 = vector.extract_strided_slice %312 {offsets = [0, 64], sizes = [2, 32], strides = [1, 1]} : vector<2x128xf32> to vector<2x32xf32>
    %316 = vector.extract_strided_slice %312 {offsets = [0, 96], sizes = [2, 32], strides = [1, 1]} : vector<2x128xf32> to vector<2x32xf32>
    %317 = arith.mulf %314, %300 : vector<2x32xf32>
    %318 = arith.mulf %313, %315 : vector<2x32xf32>
    %319 = arith.addf %317, %318 : vector<2x32xf32>
    %320 = math.tanh %319 : vector<2x32xf32>
    %321 = arith.mulf %316, %320 : vector<2x32xf32>
    %322 = vector.extract_strided_slice %180 {offsets = [14, 0], sizes = [2, 128], strides = [1, 1]} : vector<16x128xf32> to vector<2x128xf32>
    %cst_59 = arith.constant dense<0.000000e+00> : vector<2x128xf32>
    %323 = tpu.matmul %321, %174, %cst_59 {dimension_numbers = #tpu.dot_dimension_numbers<[1], [0], [0], [1], [0, 0, 1, 1], [], []>} : vector<2x32xf32>, vector<32x128xf32>, vector<2x128xf32> -> vector<2x128xf32>
    %324 = arith.addf %322, %323 : vector<2x128xf32>
    %325 = math.tanh %324 : vector<2x128xf32>
    %326 = arith.negf %324 : vector<2x128xf32>
    %327 = math.exp %326 : vector<2x128xf32>
    %cst_60 = arith.constant 1.000000e+00 : f32
    %328 = vector.broadcast %cst_60 : f32 to vector<2x128xf32>
    %329 = arith.addf %328, %327 : vector<2x128xf32>
    %330 = arith.divf %328, %329 : vector<2x128xf32>
    %331 = arith.select %188, %325, %330 : vector<2x128xi1>, vector<2x128xf32>
    %332 = vector.extract_strided_slice %331 {offsets = [0, 0], sizes = [2, 32], strides = [1, 1]} : vector<2x128xf32> to vector<2x32xf32>
    %333 = vector.extract_strided_slice %331 {offsets = [0, 32], sizes = [2, 32], strides = [1, 1]} : vector<2x128xf32> to vector<2x32xf32>
    %334 = vector.extract_strided_slice %331 {offsets = [0, 64], sizes = [2, 32], strides = [1, 1]} : vector<2x128xf32> to vector<2x32xf32>
    %335 = vector.extract_strided_slice %331 {offsets = [0, 96], sizes = [2, 32], strides = [1, 1]} : vector<2x128xf32> to vector<2x32xf32>
    %336 = arith.mulf %333, %319 : vector<2x32xf32>
    %337 = arith.mulf %332, %334 : vector<2x32xf32>
    %338 = arith.addf %336, %337 : vector<2x32xf32>
    %339 = math.tanh %338 : vector<2x32xf32>
    %340 = arith.mulf %335, %339 : vector<2x32xf32>
    %341 = tpu.concatenate %207, %226, %245, %264, %283, %302, %321, %340 in 0 : vector<2x32xf32>, vector<2x32xf32>, vector<2x32xf32>, vector<2x32xf32>, vector<2x32xf32>, vector<2x32xf32>, vector<2x32xf32>, vector<2x32xf32> -> vector<16x32xf32>
    %cst_61 = arith.constant dense<0.000000e+00> : vector<16x16xf32>
    %342 = tpu.matmul %341, %176, %cst_61 {dimension_numbers = #tpu.dot_dimension_numbers<[1], [0], [0], [1], [0, 0, 1, 1], [], []>} : vector<16x32xf32>, vector<32x16xf32>, vector<16x16xf32> -> vector<16x16xf32>
    %343 = vector.broadcast %177 : vector<1x16xf32> to vector<16x16xf32>
    %344 = arith.addf %342, %343 : vector<16x16xf32>
    %c0_62 = arith.constant 0 : index
    %c0_63 = arith.constant 0 : index
    %345 = vector.load %arg11[%c0_62, %c0_63] : memref<16x16xf32, #tpu.memory_space<vmem>>, vector<16x16xf32>
    tpu.vector_store %arg11[%c0_62, %c0_63], %344 {strides = array<i32>} : memref<16x16xf32, #tpu.memory_space<vmem>>, vector<16x16xf32>,
    return
  }
}

</mosaic_0001>

<bundles_post_ra>
// kernel: lstm_autoencoder_forward.1
= control target key start
LH: loop header
LB: loop body
LE: loop exit
PB: predicated region body
PF: predicated region fallthrough
CT: control target
= control target key end

     0   :  { %vm58_vm0 = vcmask 130048   ;;  %v2628_v3 = vmov 0.0   ;;  %vm2629_vm1 = vmmov 0   ;;  %v140_v20 = vlaneseq  ;;  %s2631_s13 = smov 32   ;;  %s3133_s1 = inlined_call_operand.vmem [shape: f32[16,128], index: 1, kind: input, shape index: {}]   ;;  %s3134_s0 = inlined_call_operand.vmem [shape: f32[16,16], index: 0, kind: input, shape index: {}]   ;;  %s3135_s2 = inlined_call_operand.vmem [shape: f32[32,128], index: 2, kind: input, shape index: {}]   ;;  %s3136_s3 = inlined_call_operand.vmem [shape: f32[1,128], index: 3, kind: input, shape index: {}]   ;;  %s3137_s4 = inlined_call_operand.vmem [shape: f32[32,8], index: 4, kind: input, shape index: {}]   ;;  %s3138_s6 = inlined_call_operand.vmem [shape: f32[8,128], index: 6, kind: input, shape index: {}]   ;;  %s3139_s7 = inlined_call_operand.vmem [shape: f32[32,128], index: 7, kind: input, shape index: {}]   ;;  %s3140_s5 = inlined_call_operand.vmem [shape: f32[1,8], index: 5, kind: input, shape index: {}]   ;;  %s3141_s8 = inlined_call_operand.vmem [shape: f32[1,128], index: 8, kind: input, shape index: {}]   ;;  %s3142_s9 = inlined_call_operand.vmem [shape: f32[32,16], index: 9, kind: input, shape index: {}]   ;;  %s3143_s10 = inlined_call_operand.vmem [shape: f32[1,16], index: 10, kind: input, shape index: {}]   ;;  %s3144_s11 = inlined_call_operand.vmem [shape: f32[16,16], index: 11, kind: output, shape index: {}]  }
   0x1   :  { %v41_v0 = vld [vmem:[%s3133_s1 + $0x8] sm:$0xff]  ;;  %v40_v1 = vld [vmem:[%s3133_s1] sm:$0xff]  ;;  %2304 = vmatprep.subr.mxu0 %v2628_v3  ;;  %2312 = vmatprep.mubr.msk.f32.mxu0 %vm2629_vm1, %v2628_v3  ;;  %v2708_v4 = vld [vmem:[%s3135_s2 + $0x18] sm:$0xff]  ;;  %vm145_vm5 = vcmask 261120   ;;  %vm996_vm6 = vcmask 1041408   ;;  %vm998_vm7 = vcmask 1043456  }
   0x2   :  { %v38_v2 = vld [vmem:[%s3134_s0] sm:$0xff]  ;;  %2286 = vmatprep.subr.mxu1 %v41_v0  ;;  %v39_v5 = vld [vmem:[%s3134_s0 + $0x8] sm:$0xff]  ;;  %2305 = vmatpush3.msra.mxu0 %v2708_v4  ;;  %v2717_v6 = vld [vmem:[%s3135_s2 + $0x10] sm:$0xff]  ;;  %v141_v21 = vand.u32 127, %v140_v20  ;;  %vm1000_vm8 = vcmask 1045504   ;;  %vm1113_vm9 = vcmask 64512  }
   0x3   :  { %2290 = vmatprep.mubr.msk.f32.mxu1 %vm58_vm0, %v38_v2  ;;  %2287 = vmatpush3.msra.mxu1 %v41_v0  ;;  %v2730_v7 = vld [vmem:[%s3135_s2 + $0x8] sm:$0xff]  ;;  %v2739_v8 = vld [vmem:[%s3135_s2] sm:$0xff]  ;;  %v1105_v22 = vld [vmem:[%s3142_s9 + $0x18] sm:$0xff] }
   0x4   :  { %2288 = vmatprep.subr.mxu1 %v40_v1  ;;  %2306 = vmatprep.subr.mxu0 %v2628_v3  ;;  %v2145_v9 = vld [vmem:[%s3136_s3] ss:$0 sm:$0xff]  ;;  %vm142_vm2 = vcmp.ge.s32.totalorder %v141_v21, 64  ;;  %vm143_vm3 = vcmp.lt.s32.totalorder %v141_v21, 96  ;;  %s2630_s3 = smov 64  }
   0x5   :  { %2289 = vmatpush3.msra.mxu1 %v40_v1  ;;  %2307 = vmatpush3.msra.mxu0 %v2717_v6  ;;  %vm2767_vm4 = vmand %vm142_vm2, %vm143_vm3 }
   0x6   :  { %2291 = vmatmul.mubr.msk.f32.vlgmr.msra.gmra.mxu1 %vm58_vm0, %v39_v5  ;;  %2293 = vmatprep.subr.mxu1 %v2628_v3 }
   0x7   :  { %2294 = vmatpush3.msra.mxu1 %v2708_v4  ;;  %2301 = vmatprep.mubr.msk.f32.mxu1 %vm2629_vm1, %v2628_v3 }
   0x8   :  { %2295 = vmatprep.subr.mxu1 %v2628_v3  ;;  %2308 = vmatprep.subr.mxu0 %v2628_v3 }
   0x9   :  { %2296 = vmatpush3.msra.mxu1 %v2717_v6  ;;  %2309 = vmatpush3.msra.mxu0 %v2730_v7 }
   0xa   :  { %2297 = vmatprep.subr.mxu1 %v2628_v3  ;;  %2310 = vmatprep.subr.mxu0 %v2628_v3 }
   0xb   :  { %2298 = vmatpush3.msra.mxu1 %v2730_v7  ;;  %2311 = vmatpush3.msra.mxu0 %v2739_v8 }
   0xc   :  { %2299 = vmatprep.subr.mxu1 %v2628_v3  ;;  %2326 = vmatprep.subr.mxu0 %v2628_v3 }
   0xd   :  { %2300 = vmatpush3.msra.mxu1 %v2739_v8 }
   0xe   :  { %2302 = vmatmul.mubr.f32.vlgmr.msra.gmra.mxu1 %v2628_v3  ;;  %2315 = vmatprep.subr.mxu1 %v2628_v3 }
   0xf   :  { %2316 = vmatpush3.msra.mxu1 %v2708_v4  ;;  %2323 = vmatprep.mubr.msk.f32.mxu1 %vm2629_vm1, %v2628_v3 }
  0x10   :  { %2317 = vmatprep.subr.mxu1 %v2628_v3 }
  0x11   :  { %2318 = vmatpush3.msra.mxu1 %v2717_v6 }
  0x12   :  { %2319 = vmatprep.subr.mxu1 %v2628_v3 }
  0x13   :  { %2320 = vmatpush3.msra.mxu1 %v2730_v7 }
  0x14   :  { %2321 = vmatprep.subr.mxu1 %v2628_v3 }
  0x15   :  { %2322 = vmatpush3.msra.mxu1 %v2739_v8 }
  0x16   :  { %2337 = vmatprep.subr.mxu1 %v2628_v3 }
  0xc6   :  { %v2292_v10 = vpop.f32.mrf.mxu1 }
  0xc7   :  { %v2762_v11 = vadd.f32 %v2292_v10, %v2145_v9 }
  0xc8   :  { %v131_v12 = vpop.f32.mrf.mxu1 }
  0xc9   :  { %v2764_v13 = vadd.f32 %v2145_v9, %v131_v12 }
  0xce   :  { %v215_v14 = vpop.f32.mrf.mxu1 }
  0xcf   :  { %v219_v15 = vadd.f32 %v215_v14, %v2764_v13 }
  0xd0   :  { %v2303_v16 = vpop.f32.mrf.mxu1 }
  0xd1   :  { %v2148_v17 = vmul.f32 -1.442695, %v219_v15 }
  0xd3   :  { %2500 = vpow2.f32 %v2148_v17 }
  0xd4   :  { %2502 = vtanh.f32 %v219_v15 }
  0xe0   :  { %v2501_v18 = vpop.eup %2500 }
  0xe1   :  { %v224_v19 = vadd.f32 1.0, %v2501_v18  ;;  %v2503_v23 = vpop.eup %2502 }
  0xe3   :  { %2504 = vrcp.f32 %v224_v19 }
  0xf0   :  { %v2505_v24 = vpop.eup %2504 }
  0xf1   :  { %v227_v25 = vsel %vm2767_vm4, %v2503_v23, %v2505_v24 }
  0xf2   :  { %230 = vrot.lane.b32.xlu0 %v227_v25, %s2630_s3  ;;  %v228_v28 = vmul.f32 0.0, %v227_v25 }
 0x164   :  { %v231_v26 = vpop.permute.xlu0 %230 }
 0x165   :  { %v233_v27 = vmul.f32 %v231_v26, %v227_v25 }
 0x167   :  { %235 = vrot.lane.b32.xlu0 %v233_v27, %s2631_s13 }
 0x1d9   :  { %v236_v29 = vpop.permute.xlu0 %235 }
 0x1da   :  { %v238_v30 = vadd.f32 %v236_v29, %v228_v28 }
 0x1dc   :  { %2506 = vtanh.f32 %v238_v30  ;;  %v333_v47 = vrot.slane %v238_v30, 6 }
 0x1e9   :  { %v2507_v31 = vpop.eup %2506 }
 0x1ea   :  { %241 = vrot.lane.b32.xlu1 %v2507_v31, %s2630_s3 }
 0x25c   :  { %v242_v32 = vpop.permute.xlu1 %241 }
 0x25d   :  { %v2776_v33 = vmul.f32 %v242_v32, %v227_v25 }
 0x25f   :  { %246 = vrot.lane.b32.xlu1 %v2776_v33, %s2631_s13 }
 0x2d1   :  { %v247_v34 = vpop.permute.xlu1 %246 }
 0x2d2   :  { %2313 = vmatmul.mubr.msk.f32.vlgmr.msra.gmra.mxu0 %vm145_vm5, %v247_v34 }
 0x2d3   :  { %2327 = vmatpush3.msra.mxu0 %v2708_v4  ;;  %2334 = vmatprep.mubr.msk.f32.mxu0 %vm2629_vm1, %v2628_v3 }
 0x2d4   :  { %2328 = vmatprep.subr.mxu0 %v2628_v3 }
 0x2d5   :  { %2329 = vmatpush3.msra.mxu0 %v2717_v6 }
 0x2d6   :  { %2330 = vmatprep.subr.mxu0 %v2628_v3 }
 0x2d7   :  { %2331 = vmatpush3.msra.mxu0 %v2730_v7 }
 0x2d8   :  { %2332 = vmatprep.subr.mxu0 %v2628_v3 }
 0x2d9   :  { %2333 = vmatpush3.msra.mxu0 %v2739_v8 }
 0x2da   :  { %2348 = vmatprep.subr.mxu0 %v2628_v3 }
 0x392   :  { %v316_v35 = vpop.f32.mrf.mxu0 }
 0x393   :  { %v321_v36 = vrot.slane %v316_v35, 6 }
 0x394   :  { %v2314_v37 = vpop.f32.mrf.mxu0 }
 0x395   :  { %v323_v38 = vadd.f32 %v321_v36, %v2764_v13 }
 0x397   :  { %v2150_v39 = vmul.f32 -1.442695, %v323_v38 }
 0x399   :  { %2508 = vpow2.f32 %v2150_v39 }
 0x39a   :  { %2510 = vtanh.f32 %v323_v38 }
 0x3a6   :  { %v2509_v40 = vpop.eup %2508 }
 0x3a7   :  { %v328_v41 = vadd.f32 1.0, %v2509_v40  ;;  %v2511_v42 = vpop.eup %2510 }
 0x3a9   :  { %2512 = vrcp.f32 %v328_v41 }
 0x3b6   :  { %v2513_v43 = vpop.eup %2512 }
 0x3b7   :  { %v331_v44 = vsel %vm2767_vm4, %v2511_v42, %v2513_v43 }
 0x3b8   :  { %337 = vrot.lane.b32.xlu0 %v331_v44, %s2630_s3  ;;  %v335_v48 = vmul.f32 %v333_v47, %v331_v44 }
 0x42a   :  { %v338_v45 = vpop.permute.xlu0 %337 }
 0x42b   :  { %v340_v46 = vmul.f32 %v338_v45, %v331_v44 }
 0x42d   :  { %342 = vrot.lane.b32.xlu1 %v340_v46, %s2631_s13 }
 0x49f   :  { %v343_v49 = vpop.permute.xlu1 %342 }
 0x4a0   :  { %v345_v50 = vadd.f32 %v343_v49, %v335_v48 }
 0x4a2   :  { %2514 = vtanh.f32 %v345_v50  ;;  %v441_v9 = vrot.slane %v345_v50, 6 }
 0x4af   :  { %v2515_v51 = vpop.eup %2514 }
 0x4b0   :  { %348 = vrot.lane.b32.xlu0 %v2515_v51, %s2630_s3 }
 0x522   :  { %v349_v52 = vpop.permute.xlu0 %348 }
 0x523   :  { %v351_v53 = vmul.f32 %v349_v52, %v331_v44 }
 0x525   :  { %v353_v54 = vrot.slane %v351_v53, 2  ;;  %v997_v18 = vsel %vm996_vm6, %v2776_v33, %v351_v53 }
 0x527   :  { %354 = vrot.lane.b32.xlu1 %v353_v54, %s2631_s13 }
 0x599   :  { %v355_v55 = vpop.permute.xlu1 %354 }
 0x59a   :  { %2324 = vmatmul.mubr.msk.f32.vlgmr.msra.gmra.mxu1 %vm145_vm5, %v355_v55 }
 0x59b   :  { %2338 = vmatpush3.msra.mxu1 %v2708_v4  ;;  %2345 = vmatprep.mubr.msk.f32.mxu1 %vm2629_vm1, %v2628_v3 }
 0x59c   :  { %2339 = vmatprep.subr.mxu1 %v2628_v3 }
 0x59d   :  { %2340 = vmatpush3.msra.mxu1 %v2717_v6 }
 0x59e   :  { %2341 = vmatprep.subr.mxu1 %v2628_v3 }
 0x59f   :  { %2342 = vmatpush3.msra.mxu1 %v2730_v7 }
 0x5a0   :  { %2343 = vmatprep.subr.mxu1 %v2628_v3 }
 0x5a1   :  { %2344 = vmatpush3.msra.mxu1 %v2739_v8 }
 0x5a2   :  { %2359 = vmatprep.subr.mxu1 %v2628_v3 }
 0x65a   :  { %v424_v56 = vpop.f32.mrf.mxu1 }
 0x65b   :  { %v429_v57 = vrot.slane %v424_v56, 4 }
 0x65c   :  { %v2325_v58 = vpop.f32.mrf.mxu1 }
 0x65d   :  { %v431_v59 = vadd.f32 %v429_v57, %v2764_v13 }
 0x65f   :  { %v2152_v60 = vmul.f32 -1.442695, %v431_v59 }
 0x661   :  { %2516 = vpow2.f32 %v2152_v60 }
 0x662   :  { %2518 = vtanh.f32 %v431_v59 }
 0x66e   :  { %v2517_v61 = vpop.eup %2516 }
 0x66f   :  { %v436_v62 = vadd.f32 1.0, %v2517_v61  ;;  %v2519_v63 = vpop.eup %2518 }
 0x671   :  { %2520 = vrcp.f32 %v436_v62 }
 0x67e   :  { %v2521_v0 = vpop.eup %2520 }
 0x67f   :  { %v439_v1 = vsel %vm2767_vm4, %v2519_v63, %v2521_v0 }
 0x680   :  { %445 = vrot.lane.b32.xlu0 %v439_v1, %s2630_s3  ;;  %v443_v10 = vmul.f32 %v441_v9, %v439_v1 }
 0x6f2   :  { %v446_v2 = vpop.permute.xlu0 %445 }
 0x6f3   :  { %v448_v5 = vmul.f32 %v446_v2, %v439_v1 }
 0x6f5   :  { %450 = vrot.lane.b32.xlu1 %v448_v5, %s2631_s13 }
 0x767   :  { %v451_v12 = vpop.permute.xlu1 %450 }
 0x768   :  { %v453_v14 = vadd.f32 %v451_v12, %v443_v10 }
 0x76a   :  { %2522 = vtanh.f32 %v453_v14  ;;  %v549_v35 = vrot.slane %v453_v14, 6 }
 0x777   :  { %v2523_v15 = vpop.eup %2522 }
 0x778   :  { %456 = vrot.lane.b32.xlu0 %v2523_v15, %s2630_s3 }
 0x7ea   :  { %v457_v16 = vpop.permute.xlu0 %456 }
 0x7eb   :  { %v459_v17 = vmul.f32 %v457_v16, %v439_v1 }
 0x7ed   :  { %v461_v19 = vrot.slane %v459_v17, 4  ;;  %v999_v20 = vsel %vm998_vm7, %v997_v18, %v459_v17 }
 0x7ef   :  { %462 = vrot.lane.b32.xlu1 %v461_v19, %s2631_s13 }
 0x861   :  { %v463_v21 = vpop.permute.xlu1 %462 }
 0x862   :  { %2335 = vmatmul.mubr.msk.f32.vlgmr.msra.gmra.mxu0 %vm145_vm5, %v463_v21 }
 0x863   :  { %2349 = vmatpush3.msra.mxu0 %v2708_v4  ;;  %2356 = vmatprep.mubr.msk.f32.mxu0 %vm2629_vm1, %v2628_v3 }
 0x864   :  { %2350 = vmatprep.subr.mxu0 %v2628_v3 }
 0x865   :  { %2351 = vmatpush3.msra.mxu0 %v2717_v6 }
 0x866   :  { %2352 = vmatprep.subr.mxu0 %v2628_v3 }
 0x867   :  { %2353 = vmatpush3.msra.mxu0 %v2730_v7 }
 0x868   :  { %2354 = vmatprep.subr.mxu0 %v2628_v3 }
 0x869   :  { %2355 = vmatpush3.msra.mxu0 %v2739_v8 }
 0x86a   :  { %2370 = vmatprep.subr.mxu0 %v2628_v3 }
 0x922   :  { %v532_v23 = vpop.f32.mrf.mxu0 }
 0x923   :  { %v537_v24 = vrot.slane %v532_v23, 2 }
 0x924   :  { %v2336_v25 = vpop.f32.mrf.mxu0 }
 0x925   :  { %v539_v26 = vadd.f32 %v537_v24, %v2764_v13 }
 0x927   :  { %v2154_v27 = vmul.f32 -1.442695, %v539_v26 }
 0x929   :  { %2524 = vpow2.f32 %v2154_v27 }
 0x92a   :  { %2526 = vtanh.f32 %v539_v26 }
 0x936   :  { %v2525_v28 = vpop.eup %2524 }
 0x937   :  { %v544_v29 = vadd.f32 1.0, %v2525_v28  ;;  %v2527_v30 = vpop.eup %2526 }
 0x939   :  { %2528 = vrcp.f32 %v544_v29 }
 0x946   :  { %v2529_v31 = vpop.eup %2528 }
 0x947   :  { %v547_v32 = vsel %vm2767_vm4, %v2527_v30, %v2529_v31 }
 0x948   :  { %553 = vrot.lane.b32.xlu0 %v547_v32, %s2630_s3  ;;  %v551_v36 = vmul.f32 %v549_v35, %v547_v32 }
 0x9ba   :  { %v554_v33 = vpop.permute.xlu0 %553 }
 0x9bb   :  { %v556_v34 = vmul.f32 %v554_v33, %v547_v32 }
 0x9bd   :  { %558 = vrot.lane.b32.xlu1 %v556_v34, %s2631_s13 }
 0xa2f   :  { %v559_v13 = vpop.permute.xlu1 %558 }
 0xa30   :  { %v561_v37 = vadd.f32 %v559_v13, %v551_v36 }
 0xa32   :  { %2530 = vtanh.f32 %v561_v37  ;;  %v654_v55 = vrot.slane %v561_v37, 6 }
 0xa3f   :  { %v2531_v38 = vpop.eup %2530 }
 0xa40   :  { %564 = vrot.lane.b32.xlu0 %v2531_v38, %s2630_s3 }
 0xab2   :  { %v565_v39 = vpop.permute.xlu0 %564 }
 0xab3   :  { %v567_v40 = vmul.f32 %v565_v39, %v547_v32 }
 0xab5   :  { %v569_v41 = vrot.slane %v567_v40, 6  ;;  %v2837_v42 = vsel %vm1000_vm8, %v999_v20, %v567_v40 }
 0xab7   :  { %570 = vrot.lane.b32.xlu1 %v569_v41, %s2631_s13 }
 0xb29   :  { %v571_v43 = vpop.permute.xlu1 %570 }
 0xb2a   :  { %2346 = vmatmul.mubr.msk.f32.vlgmr.msra.gmra.mxu1 %vm145_vm5, %v571_v43 }
 0xb2b   :  { %2360 = vmatpush3.msra.mxu1 %v2708_v4  ;;  %2367 = vmatprep.mubr.msk.f32.mxu1 %vm2629_vm1, %v2628_v3 }
 0xb2c   :  { %2361 = vmatprep.subr.mxu1 %v2628_v3 }
 0xb2d   :  { %2362 = vmatpush3.msra.mxu1 %v2717_v6 }
 0xb2e   :  { %2363 = vmatprep.subr.mxu1 %v2628_v3 }
 0xb2f   :  { %2364 = vmatpush3.msra.mxu1 %v2730_v7 }
 0xb30   :  { %2365 = vmatprep.subr.mxu1 %v2628_v3 }
 0xb31   :  { %2366 = vmatpush3.msra.mxu1 %v2739_v8 }
 0xbea   :  { %v640_v44 = vpop.f32.mrf.mxu1 }
 0xbeb   :  { %v644_v45 = vadd.f32 %v640_v44, %v2762_v11 }
 0xbec   :  { %v2347_v46 = vpop.f32.mrf.mxu1 }
 0xbed   :  { %v2156_v47 = vmul.f32 -1.442695, %v644_v45 }
 0xbef   :  { %2532 = vpow2.f32 %v2156_v47 }
 0xbf0   :  { %2534 = vtanh.f32 %v644_v45 }
 0xbfc   :  { %v2533_v48 = vpop.eup %2532 }
 0xbfd   :  { %v649_v49 = vadd.f32 1.0, %v2533_v48  ;;  %v2535_v50 = vpop.eup %2534 }
 0xbff   :  { %2536 = vrcp.f32 %v649_v49 }
 0xc0c   :  { %v2537_v51 = vpop.eup %2536 }
 0xc0d   :  { %v652_v52 = vsel %vm2767_vm4, %v2535_v50, %v2537_v51 }
 0xc0e   :  { %658 = vrot.lane.b32.xlu0 %v652_v52, %s2630_s3  ;;  %v656_v56 = vmul.f32 %v654_v55, %v652_v52 }
 0xc80   :  { %v659_v53 = vpop.permute.xlu0 %658 }
 0xc81   :  { %v661_v54 = vmul.f32 %v659_v53, %v652_v52 }
 0xc83   :  { %663 = vrot.lane.b32.xlu1 %v661_v54, %s2631_s13 }
 0xcf5   :  { %v664_v57 = vpop.permute.xlu1 %663 }
 0xcf6   :  { %v666_v58 = vadd.f32 %v664_v57, %v656_v56 }
 0xcf8   :  { %2538 = vtanh.f32 %v666_v58  ;;  %v761_v14 = vrot.slane %v666_v58, 6 }
 0xd05   :  { %v2539_v59 = vpop.eup %2538 }
 0xd06   :  { %669 = vrot.lane.b32.xlu0 %v2539_v59, %s2630_s3 }
 0xd78   :  { %v670_v60 = vpop.permute.xlu0 %669 }
 0xd79   :  { %v2856_v61 = vmul.f32 %v670_v60, %v652_v52 }
 0xd7b   :  { %674 = vrot.lane.b32.xlu1 %v2856_v61, %s2631_s13 }
 0xded   :  { %v675_v62 = vpop.permute.xlu1 %674 }
 0xdee   :  { %2357 = vmatmul.mubr.msk.f32.vlgmr.msra.gmra.mxu0 %vm145_vm5, %v675_v62 }
 0xdef   :  { %2371 = vmatpush3.msra.mxu0 %v2708_v4  ;;  %2378 = vmatprep.mubr.msk.f32.mxu0 %vm2629_vm1, %v2628_v3 }
 0xdf0   :  { %2372 = vmatprep.subr.mxu0 %v2628_v3 }
 0xdf1   :  { %2373 = vmatpush3.msra.mxu0 %v2717_v6 }
 0xdf2   :  { %2374 = vmatprep.subr.mxu0 %v2628_v3 }
 0xdf3   :  { %2375 = vmatpush3.msra.mxu0 %v2730_v7 }
 0xdf4   :  { %2376 = vmatprep.subr.mxu0 %v2628_v3 }
 0xdf5   :  { %2377 = vmatpush3.msra.mxu0 %v2739_v8 }
 0xeae   :  { %v744_v63 = vpop.f32.mrf.mxu0 }
 0xeaf   :  { %v749_v0 = vrot.slane %v744_v63, 6  ;;  %v50_v63 = vld [vmem:[%s3137_s4 + $0x18] sm:$0xff] }
 0xeb0   :  { %v2358_v1 = vpop.f32.mrf.mxu0  ;;  %2381 = vmatprep.subr.mxu1 %v50_v63 }
 0xeb1   :  { %v751_v4 = vadd.f32 %v749_v0, %v2762_v11  ;;  %v49_v0 = vld [vmem:[%s3137_s4 + $0x10] sm:$0xff]  ;;  %v47_v1 = vld [vmem:[%s3137_s4] sm:$0xff] }
 0xeb3   :  { %v2158_v2 = vmul.f32 -1.442695, %v751_v4 }
 0xeb5   :  { %2540 = vpow2.f32 %v2158_v2 }
 0xeb6   :  { %2542 = vtanh.f32 %v751_v4 }
 0xec2   :  { %v2541_v5 = vpop.eup %2540 }
 0xec3   :  { %v756_v9 = vadd.f32 1.0, %v2541_v5  ;;  %v2543_v6 = vpop.eup %2542 }
 0xec5   :  { %2544 = vrcp.f32 %v756_v9 }
 0xed2   :  { %v2545_v10 = vpop.eup %2544 }
 0xed3   :  { %v759_v7 = vsel %vm2767_vm4, %v2543_v6, %v2545_v10  ;;  %v1096_v10 = vld [vmem:[%s3138_s6] sm:$0xff] }
 0xed4   :  { %765 = vrot.lane.b32.xlu0 %v759_v7, %s2630_s3  ;;  %v763_v15 = vmul.f32 %v761_v14, %v759_v7  ;;  %2392 = vmatprep.subr.mxu0 %v1096_v10  ;;  %v2943_v14 = vld [vmem:[%s3139_s7] sm:$0xff] }
 0xf46   :  { %v766_v12 = vpop.permute.xlu0 %765 }
 0xf47   :  { %v768_v8 = vmul.f32 %v766_v12, %v759_v7  ;;  %v2930_v12 = vld [vmem:[%s3139_s7 + $0x10] sm:$0xff] }
 0xf49   :  { %770 = vrot.lane.b32.xlu1 %v768_v8, %s2631_s13  ;;  %v2936_v8 = vld [vmem:[%s3139_s7 + $0x8] sm:$0xff] }
 0xfbb   :  { %v771_v16 = vpop.permute.xlu1 %770 }
 0xfbc   :  { %v773_v17 = vadd.f32 %v771_v16, %v763_v15  ;;  %v2163_v16 = vld [vmem:[%s3140_s5] ss:$0 sm:$0xff] }
 0xfbe   :  { %2546 = vtanh.f32 %v773_v17  ;;  %v869_v36 = vrot.slane %v773_v17, 6 }
 0xfcb   :  { %v2547_v18 = vpop.eup %2546 }
 0xfcc   :  { %776 = vrot.lane.b32.xlu0 %v2547_v18, %s2630_s3 }
0x103e   :  { %v777_v19 = vpop.permute.xlu0 %776 }
0x103f   :  { %v779_v20 = vmul.f32 %v777_v19, %v759_v7  ;;  %v2923_v7 = vld [vmem:[%s3139_s7 + $0x18] sm:$0xff] }
0x1041   :  { %v781_v21 = vrot.slane %v779_v20, 2  ;;  %v1002_v43 = vsel %vm996_vm6, %v2856_v61, %v779_v20  ;;  %v2166_v20 = vld [vmem:[%s3141_s8] ss:$0 sm:$0xff] }
0x1043   :  { %782 = vrot.lane.b32.xlu1 %v781_v21, %s2631_s13 }
0x10b5   :  { %v783_v23 = vpop.permute.xlu1 %782 }
0x10b6   :  { %2368 = vmatmul.mubr.msk.f32.vlgmr.msra.gmra.mxu1 %vm145_vm5, %v783_v23 }
0x10b7   :  { %2382 = vmatpush3.msra.mxu1 %v50_v63 }
0x10b8   :  { %2383 = vmatprep.subr.mxu1 %v49_v0 }
0x10b9   :  { %2384 = vmatpush3.msra.mxu1 %v49_v0 }
0x1176   :  { %v852_v24 = vpop.f32.mrf.mxu1 }
0x1177   :  { %v857_v25 = vrot.slane %v852_v24, 4 }
0x1178   :  { %v2369_v26 = vpop.f32.mrf.mxu1 }
0x1179   :  { %v859_v27 = vadd.f32 %v857_v25, %v2762_v11 }
0x117b   :  { %v2160_v28 = vmul.f32 -1.442695, %v859_v27 }
0x117d   :  { %2548 = vpow2.f32 %v2160_v28 }
0x117e   :  { %2550 = vtanh.f32 %v859_v27 }
0x118a   :  { %v2549_v29 = vpop.eup %2548 }
0x118b   :  { %v864_v30 = vadd.f32 1.0, %v2549_v29  ;;  %v2551_v31 = vpop.eup %2550 }
0x118d   :  { %2552 = vrcp.f32 %v864_v30 }
0x119a   :  { %v2553_v32 = vpop.eup %2552 }
0x119b   :  { %v867_v33 = vsel %vm2767_vm4, %v2551_v31, %v2553_v32 }
0x119c   :  { %873 = vrot.lane.b32.xlu0 %v867_v33, %s2630_s3  ;;  %v871_v13 = vmul.f32 %v869_v36, %v867_v33 }
0x120e   :  { %v874_v34 = vpop.permute.xlu0 %873 }
0x120f   :  { %v876_v35 = vmul.f32 %v874_v34, %v867_v33 }
0x1211   :  { %878 = vrot.lane.b32.xlu1 %v876_v35, %s2631_s13 }
0x1283   :  { %v879_v37 = vpop.permute.xlu1 %878 }
0x1284   :  { %v881_v38 = vadd.f32 %v879_v37, %v871_v13 }
0x1286   :  { %2554 = vtanh.f32 %v881_v38 }
0x1293   :  { %v2555_v39 = vpop.eup %2554 }
0x1294   :  { %884 = vrot.lane.b32.xlu0 %v2555_v39, %s2630_s3 }
0x1306   :  { %v885_v40 = vpop.permute.xlu0 %884 }
0x1307   :  { %v887_v41 = vmul.f32 %v885_v40, %v867_v33 }
0x1309   :  { %v889_v44 = vrot.slane %v887_v41, 4  ;;  %v1003_v45 = vsel %vm998_vm7, %v1002_v43, %v887_v41 }
0x130b   :  { %890 = vrot.lane.b32.xlu1 %v889_v44, %s2631_s13 }
0x137d   :  { %v891_v46 = vpop.permute.xlu1 %890 }
0x137e   :  { %2379 = vmatmul.mubr.msk.f32.vlgmr.msra.gmra.mxu0 %vm145_vm5, %v891_v46 }
0x137f   :  { %2393 = vmatpush3.msra.mxu0 %v1096_v10 }
0x1380   :  { %2397 = vmatprep.subr.mxu0 %v2628_v3 }
0x143e   :  { %v960_v47 = vpop.f32.mrf.mxu0 }
0x143f   :  { %v965_v48 = vrot.slane %v960_v47, 2 }
0x1440   :  { %v2380_v49 = vpop.f32.mrf.mxu0 }
0x1441   :  { %v967_v50 = vadd.f32 %v965_v48, %v2762_v11  ;;  %v977_v11 = vrot.slane %v881_v38, 6 }
0x1443   :  { %v2162_v51 = vmul.f32 -1.442695, %v967_v50 }
0x1445   :  { %2556 = vpow2.f32 %v2162_v51 }
0x1446   :  { %2558 = vtanh.f32 %v967_v50 }
0x1452   :  { %v2557_v52 = vpop.eup %2556 }
0x1453   :  { %v972_v53 = vadd.f32 1.0, %v2557_v52  ;;  %v2559_v54 = vpop.eup %2558 }
0x1455   :  { %2560 = vrcp.f32 %v972_v53 }
0x1462   :  { %v2561_v55 = vpop.eup %2560 }
0x1463   :  { %v975_v56 = vsel %vm2767_vm4, %v2559_v54, %v2561_v55 }
0x1464   :  { %981 = vrot.lane.b32.xlu0 %v975_v56, %s2630_s3  ;;  %v979_v59 = vmul.f32 %v977_v11, %v975_v56 }
0x14d6   :  { %v982_v57 = vpop.permute.xlu0 %981 }
0x14d7   :  { %v984_v58 = vmul.f32 %v982_v57, %v975_v56 }
0x14d9   :  { %986 = vrot.lane.b32.xlu1 %v984_v58, %s2631_s13 }
0x14dd   :  { %1013 = vrot.lane.b32.xlu1 %v2837_v42, %s2631_s13  ;;  %v48_v42 = vld [vmem:[%s3137_s4 + $0x8] sm:$0xff] }
0x14de   :  { %2385 = vmatprep.subr.mxu1 %v48_v42 }
0x14df   :  { %2386 = vmatpush3.msra.mxu1 %v48_v42 }
0x14e0   :  { %2387 = vmatprep.subr.mxu1 %v47_v1 }
0x14e1   :  { %2388 = vmatpush3.msra.mxu1 %v47_v1 }
0x14e2   :  { %2408 = vmatprep.subr.mxu1 %v2628_v3 }
0x154b   :  { %v987_v60 = vpop.permute.xlu1 %986 }
0x154c   :  { %v989_v61 = vadd.f32 %v987_v60, %v979_v59 }
0x154e   :  { %2562 = vtanh.f32 %v989_v61 }
0x154f   :  { %v1014_v62 = vpop.permute.xlu1 %1013 }
0x1550   :  { %2389 = vmatprep.mubr.msk.f32.mxu1 %vm145_vm5, %v1014_v62 }
0x155b   :  { %v2563_v4 = vpop.eup %2562 }
0x155c   :  { %992 = vrot.lane.b32.xlu0 %v2563_v4, %s2630_s3 }
0x15ce   :  { %v993_v2 = vpop.permute.xlu0 %992 }
0x15cf   :  { %v995_v5 = vmul.f32 %v993_v2, %v975_v56 }
0x15d1   :  { %v1004_v9 = vsel %vm1000_vm8, %v1003_v45, %v995_v5 }
0x15d2   :  { %1015 = vrot.lane.b32.xlu0 %v1004_v9, %s2631_s13 }
0x1644   :  { %v1016_v6 = vpop.permute.xlu0 %1015 }
0x1645   :  { %2390 = vmatmul.mubr.msk.f32.vlgmr.msra.gmra.mxu1 %vm145_vm5, %v1016_v6 }
0x1646   :  { %2416 = vmatprep.mubr.msk.f32.mxu1 %vm2629_vm1, %v2628_v3  ;;  %2409 = vmatpush3.msra.mxu1 %v2923_v7 }
0x1647   :  { %2410 = vmatprep.subr.mxu1 %v2628_v3 }
0x1648   :  { %2411 = vmatpush3.msra.mxu1 %v2930_v12 }
0x1649   :  { %2412 = vmatprep.subr.mxu1 %v2628_v3 }
0x164a   :  { %2413 = vmatpush3.msra.mxu1 %v2936_v8 }
0x164b   :  { %2414 = vmatprep.subr.mxu1 %v2628_v3 }
0x164c   :  { %2415 = vmatpush3.msra.mxu1 %v2943_v14 }
0x164d   :  { %2430 = vmatprep.subr.mxu1 %v2628_v3 }
0x1705   :  { %v2391_v15 = vpop.f32.mrf.mxu1 }
0x1706   :  { %v1093_v19 = vadd.f32 %v2391_v15, %v2163_v16 }
0x1707   :  { %v1087_v17 = vpop.f32.mrf.mxu1 }
0x1708   :  { %v1088_v18 = vadd.f32 %v2163_v16, %v1087_v17 }
0x170a   :  { %2394 = vmatprep.mubr.msk.f32.mxu0 %vm1113_vm9, %v1088_v18 }
0x170b   :  { %2395 = vmatmul.mubr.msk.f32.vlgmr.msra.gmra.mxu0 %vm1113_vm9, %v1093_v19 }
0x170c   :  { %2398 = vmatpush3.msra.mxu0 %v2923_v7  ;;  %2405 = vmatprep.mubr.msk.f32.mxu0 %vm2629_vm1, %v2628_v3 }
0x170d   :  { %2399 = vmatprep.subr.mxu0 %v2628_v3 }
0x170e   :  { %2400 = vmatpush3.msra.mxu0 %v2930_v12 }
0x170f   :  { %2401 = vmatprep.subr.mxu0 %v2628_v3 }
0x1710   :  { %2402 = vmatpush3.msra.mxu0 %v2936_v8 }
0x1711   :  { %2403 = vmatprep.subr.mxu0 %v2628_v3 }
0x1712   :  { %2404 = vmatpush3.msra.mxu0 %v2943_v14 }
0x1713   :  { %2406 = vmatmul.mubr.f32.vlgmr.msra.gmra.mxu0 %v2628_v3  ;;  %2419 = vmatprep.subr.mxu0 %v2628_v3 }
0x1714   :  { %2420 = vmatpush3.msra.mxu0 %v2923_v7  ;;  %2427 = vmatprep.mubr.msk.f32.mxu0 %vm2629_vm1, %v2628_v3 }
0x1715   :  { %2421 = vmatprep.subr.mxu0 %v2628_v3 }
0x1716   :  { %2422 = vmatpush3.msra.mxu0 %v2930_v12 }
0x1717   :  { %2423 = vmatprep.subr.mxu0 %v2628_v3 }
0x1718   :  { %2424 = vmatpush3.msra.mxu0 %v2936_v8 }
0x1719   :  { %2425 = vmatprep.subr.mxu0 %v2628_v3 }
0x171a   :  { %2426 = vmatpush3.msra.mxu0 %v2943_v14 }
0x171b   :  { %2441 = vmatprep.subr.mxu0 %v2628_v3 }
0x17cb   :  { %v2396_v21 = vpop.f32.mrf.mxu0 }
0x17cc   :  { %v2975_v23 = vadd.f32 %v2396_v21, %v2166_v20 }
0x17cd   :  { %v1186_v24 = vpop.f32.mrf.mxu0 }
0x17ce   :  { %v2977_v25 = vadd.f32 %v2166_v20, %v1186_v24 }
0x17d3   :  { %v1261_v26 = vpop.f32.mrf.mxu0 }
0x17d4   :  { %v1265_v27 = vadd.f32 %v1261_v26, %v2977_v25 }
0x17d5   :  { %v2407_v28 = vpop.f32.mrf.mxu0 }
0x17d6   :  { %v2169_v29 = vmul.f32 -1.442695, %v1265_v27 }
0x17d8   :  { %2564 = vpow2.f32 %v2169_v29 }
0x17d9   :  { %2566 = vtanh.f32 %v1265_v27 }
0x17e5   :  { %v2565_v30 = vpop.eup %2564 }
0x17e6   :  { %v1270_v31 = vadd.f32 1.0, %v2565_v30  ;;  %v2567_v32 = vpop.eup %2566 }
0x17e8   :  { %2568 = vrcp.f32 %v1270_v31 }
0x17f5   :  { %v2569_v33 = vpop.eup %2568 }
0x17f6   :  { %v1273_v34 = vsel %vm2767_vm4, %v2567_v32, %v2569_v33 }
0x17f7   :  { %1276 = vrot.lane.b32.xlu1 %v1273_v34, %s2630_s3  ;;  %v1274_v13 = vmul.f32 0.0, %v1273_v34 }
0x1869   :  { %v1277_v35 = vpop.permute.xlu1 %1276 }
0x186a   :  { %v1279_v36 = vmul.f32 %v1277_v35, %v1273_v34 }
0x186c   :  { %1281 = vrot.lane.b32.xlu0 %v1279_v36, %s2631_s13 }
0x18de   :  { %v1282_v37 = vpop.permute.xlu0 %1281 }
0x18df   :  { %v1284_v38 = vadd.f32 %v1282_v37, %v1274_v13 }
0x18e1   :  { %2570 = vtanh.f32 %v1284_v38  ;;  %v1379_v56 = vrot.slane %v1284_v38, 6 }
0x18ee   :  { %v2571_v39 = vpop.eup %2570 }
0x18ef   :  { %1287 = vrot.lane.b32.xlu1 %v2571_v39, %s2630_s3 }
0x1961   :  { %v1288_v40 = vpop.permute.xlu1 %1287 }
0x1962   :  { %v2985_v41 = vmul.f32 %v1288_v40, %v1273_v34 }
0x1964   :  { %1292 = vrot.lane.b32.xlu0 %v2985_v41, %s2631_s13 }
0x19d6   :  { %v1293_v43 = vpop.permute.xlu0 %1292 }
0x19d7   :  { %2417 = vmatmul.mubr.msk.f32.vlgmr.msra.gmra.mxu1 %vm145_vm5, %v1293_v43 }
0x19d8   :  { %2431 = vmatpush3.msra.mxu1 %v2923_v7  ;;  %2438 = vmatprep.mubr.msk.f32.mxu1 %vm2629_vm1, %v2628_v3 }
0x19d9   :  { %2432 = vmatprep.subr.mxu1 %v2628_v3 }
0x19da   :  { %2433 = vmatpush3.msra.mxu1 %v2930_v12 }
0x19db   :  { %2434 = vmatprep.subr.mxu1 %v2628_v3 }
0x19dc   :  { %2435 = vmatpush3.msra.mxu1 %v2936_v8 }
0x19dd   :  { %2436 = vmatprep.subr.mxu1 %v2628_v3 }
0x19de   :  { %2437 = vmatpush3.msra.mxu1 %v2943_v14 }
0x19df   :  { %2452 = vmatprep.subr.mxu1 %v2628_v3 }
0x1a97   :  { %v1362_v44 = vpop.f32.mrf.mxu1 }
0x1a98   :  { %v1367_v45 = vrot.slane %v1362_v44, 6 }
0x1a99   :  { %v2418_v46 = vpop.f32.mrf.mxu1 }
0x1a9a   :  { %v1369_v47 = vadd.f32 %v1367_v45, %v2977_v25 }
0x1a9c   :  { %v2171_v48 = vmul.f32 -1.442695, %v1369_v47 }
0x1a9e   :  { %2572 = vpow2.f32 %v2171_v48 }
0x1a9f   :  { %2574 = vtanh.f32 %v1369_v47 }
0x1aab   :  { %v2573_v49 = vpop.eup %2572 }
0x1aac   :  { %v1374_v50 = vadd.f32 1.0, %v2573_v49  ;;  %v2575_v51 = vpop.eup %2574 }
0x1aae   :  { %2576 = vrcp.f32 %v1374_v50 }
0x1abb   :  { %v2577_v52 = vpop.eup %2576 }
0x1abc   :  { %v1377_v53 = vsel %vm2767_vm4, %v2575_v51, %v2577_v52 }
0x1abd   :  { %1383 = vrot.lane.b32.xlu1 %v1377_v53, %s2630_s3  ;;  %v1381_v57 = vmul.f32 %v1379_v56, %v1377_v53 }
0x1b2f   :  { %v1384_v54 = vpop.permute.xlu1 %1383 }
0x1b30   :  { %v1386_v55 = vmul.f32 %v1384_v54, %v1377_v53 }
0x1b32   :  { %1388 = vrot.lane.b32.xlu0 %v1386_v55, %s2631_s13 }
0x1ba4   :  { %v1389_v58 = vpop.permute.xlu0 %1388 }
0x1ba5   :  { %v1391_v11 = vadd.f32 %v1389_v58, %v1381_v57 }
0x1ba7   :  { %2578 = vtanh.f32 %v1391_v11  ;;  %v1487_v18 = vrot.slane %v1391_v11, 6 }
0x1bb4   :  { %v2579_v59 = vpop.eup %2578 }
0x1bb5   :  { %1394 = vrot.lane.b32.xlu1 %v2579_v59, %s2630_s3 }
0x1c27   :  { %v1395_v60 = vpop.permute.xlu1 %1394 }
0x1c28   :  { %v1397_v61 = vmul.f32 %v1395_v60, %v1377_v53 }
0x1c2a   :  { %v1399_v62 = vrot.slane %v1397_v61, 2  ;;  %v2042_v28 = vsel %vm996_vm6, %v2985_v41, %v1397_v61 }
0x1c2c   :  { %1400 = vrot.lane.b32.xlu0 %v1399_v62, %s2631_s13 }
0x1c9e   :  { %v1401_v63 = vpop.permute.xlu0 %1400 }
0x1c9f   :  { %2428 = vmatmul.mubr.msk.f32.vlgmr.msra.gmra.mxu0 %vm145_vm5, %v1401_v63 }
0x1ca0   :  { %2442 = vmatpush3.msra.mxu0 %v2923_v7  ;;  %2449 = vmatprep.mubr.msk.f32.mxu0 %vm2629_vm1, %v2628_v3 }
0x1ca1   :  { %2443 = vmatprep.subr.mxu0 %v2628_v3 }
0x1ca2   :  { %2444 = vmatpush3.msra.mxu0 %v2930_v12 }
0x1ca3   :  { %2445 = vmatprep.subr.mxu0 %v2628_v3 }
0x1ca4   :  { %2446 = vmatpush3.msra.mxu0 %v2936_v8 }
0x1ca5   :  { %2447 = vmatprep.subr.mxu0 %v2628_v3 }
0x1ca6   :  { %2448 = vmatpush3.msra.mxu0 %v2943_v14 }
0x1ca7   :  { %2463 = vmatprep.subr.mxu0 %v2628_v3 }
0x1d5f   :  { %v1470_v0 = vpop.f32.mrf.mxu0 }
0x1d60   :  { %v1475_v42 = vrot.slane %v1470_v0, 4 }
0x1d61   :  { %v2429_v1 = vpop.f32.mrf.mxu0 }
0x1d62   :  { %v1477_v4 = vadd.f32 %v1475_v42, %v2977_v25 }
0x1d64   :  { %v2173_v2 = vmul.f32 -1.442695, %v1477_v4 }
0x1d66   :  { %2580 = vpow2.f32 %v2173_v2 }
0x1d67   :  { %2582 = vtanh.f32 %v1477_v4 }
0x1d73   :  { %v2581_v5 = vpop.eup %2580 }
0x1d74   :  { %v1482_v9 = vadd.f32 1.0, %v2581_v5  ;;  %v2583_v6 = vpop.eup %2582 }
0x1d76   :  { %2584 = vrcp.f32 %v1482_v9 }
0x1d83   :  { %v2585_v10 = vpop.eup %2584 }
0x1d84   :  { %v1485_v15 = vsel %vm2767_vm4, %v2583_v6, %v2585_v10 }
0x1d85   :  { %1491 = vrot.lane.b32.xlu1 %v1485_v15, %s2630_s3  ;;  %v1489_v19 = vmul.f32 %v1487_v18, %v1485_v15 }
0x1df7   :  { %v1492_v16 = vpop.permute.xlu1 %1491 }
0x1df8   :  { %v1494_v17 = vmul.f32 %v1492_v16, %v1485_v15 }
0x1dfa   :  { %1496 = vrot.lane.b32.xlu0 %v1494_v17, %s2631_s13 }
0x1e6c   :  { %v1497_v20 = vpop.permute.xlu0 %1496 }
0x1e6d   :  { %v1499_v21 = vadd.f32 %v1497_v20, %v1489_v19 }
0x1e6f   :  { %2586 = vtanh.f32 %v1499_v21  ;;  %v1595_v44 = vrot.slane %v1499_v21, 6 }
0x1e7c   :  { %v2587_v24 = vpop.eup %2586 }
0x1e7d   :  { %1502 = vrot.lane.b32.xlu1 %v2587_v24, %s2630_s3 }
0x1eef   :  { %v1503_v26 = vpop.permute.xlu1 %1502 }
0x1ef0   :  { %v1505_v27 = vmul.f32 %v1503_v26, %v1485_v15 }
0x1ef2   :  { %v1507_v29 = vrot.slane %v1505_v27, 4  ;;  %v2043_v30 = vsel %vm998_vm7, %v2042_v28, %v1505_v27 }
0x1ef4   :  { %1508 = vrot.lane.b32.xlu0 %v1507_v29, %s2631_s13 }
0x1f66   :  { %v1509_v31 = vpop.permute.xlu0 %1508 }
0x1f67   :  { %2439 = vmatmul.mubr.msk.f32.vlgmr.msra.gmra.mxu1 %vm145_vm5, %v1509_v31 }
0x1f68   :  { %2453 = vmatpush3.msra.mxu1 %v2923_v7  ;;  %2460 = vmatprep.mubr.msk.f32.mxu1 %vm2629_vm1, %v2628_v3 }
0x1f69   :  { %2454 = vmatprep.subr.mxu1 %v2628_v3 }
0x1f6a   :  { %2455 = vmatpush3.msra.mxu1 %v2930_v12 }
0x1f6b   :  { %2456 = vmatprep.subr.mxu1 %v2628_v3 }
0x1f6c   :  { %2457 = vmatpush3.msra.mxu1 %v2936_v8 }
0x1f6d   :  { %2458 = vmatprep.subr.mxu1 %v2628_v3 }
0x1f6e   :  { %2459 = vmatpush3.msra.mxu1 %v2943_v14 }
0x1f6f   :  { %2474 = vmatprep.subr.mxu1 %v2628_v3 }
0x2027   :  { %v1578_v32 = vpop.f32.mrf.mxu1 }
0x2028   :  { %v1583_v33 = vrot.slane %v1578_v32, 2 }
0x2029   :  { %v2440_v34 = vpop.f32.mrf.mxu1 }
0x202a   :  { %v1585_v35 = vadd.f32 %v1583_v33, %v2977_v25 }
0x202c   :  { %v2175_v36 = vmul.f32 -1.442695, %v1585_v35 }
0x202e   :  { %2588 = vpow2.f32 %v2175_v36 }
0x202f   :  { %2590 = vtanh.f32 %v1585_v35 }
0x203b   :  { %v2589_v13 = vpop.eup %2588 }
0x203c   :  { %v1590_v37 = vadd.f32 1.0, %v2589_v13  ;;  %v2591_v38 = vpop.eup %2590 }
0x203e   :  { %2592 = vrcp.f32 %v1590_v37 }
0x204b   :  { %v2593_v39 = vpop.eup %2592 }
0x204c   :  { %v1593_v40 = vsel %vm2767_vm4, %v2591_v38, %v2593_v39 }
0x204d   :  { %1599 = vrot.lane.b32.xlu1 %v1593_v40, %s2630_s3  ;;  %v1597_v45 = vmul.f32 %v1595_v44, %v1593_v40 }
0x20bf   :  { %v1600_v41 = vpop.permute.xlu1 %1599 }
0x20c0   :  { %v1602_v43 = vmul.f32 %v1600_v41, %v1593_v40 }
0x20c2   :  { %1604 = vrot.lane.b32.xlu0 %v1602_v43, %s2631_s13 }
0x2134   :  { %v1605_v25 = vpop.permute.xlu0 %1604 }
0x2135   :  { %v1607_v46 = vadd.f32 %v1605_v25, %v1597_v45 }
0x2137   :  { %2594 = vtanh.f32 %v1607_v46  ;;  %v1700_v63 = vrot.slane %v1607_v46, 6 }
0x2144   :  { %v2595_v47 = vpop.eup %2594 }
0x2145   :  { %1610 = vrot.lane.b32.xlu1 %v2595_v47, %s2630_s3 }
0x21b7   :  { %v1611_v48 = vpop.permute.xlu1 %1610 }
0x21b8   :  { %v1613_v49 = vmul.f32 %v1611_v48, %v1593_v40 }
0x21ba   :  { %v1615_v50 = vrot.slane %v1613_v49, 6  ;;  %v3046_v51 = vsel %vm1000_vm8, %v2043_v30, %v1613_v49 }
0x21bc   :  { %1616 = vrot.lane.b32.xlu0 %v1615_v50, %s2631_s13 }
0x222e   :  { %v1617_v52 = vpop.permute.xlu0 %1616 }
0x222f   :  { %2450 = vmatmul.mubr.msk.f32.vlgmr.msra.gmra.mxu0 %vm145_vm5, %v1617_v52 }
0x2230   :  { %2464 = vmatpush3.msra.mxu0 %v2923_v7  ;;  %2471 = vmatprep.mubr.msk.f32.mxu0 %vm2629_vm1, %v2628_v3 }
0x2231   :  { %2465 = vmatprep.subr.mxu0 %v2628_v3 }
0x2232   :  { %2466 = vmatpush3.msra.mxu0 %v2930_v12 }
0x2233   :  { %2467 = vmatprep.subr.mxu0 %v2628_v3 }
0x2234   :  { %2468 = vmatpush3.msra.mxu0 %v2936_v8 }
0x2235   :  { %2469 = vmatprep.subr.mxu0 %v2628_v3 }
0x2236   :  { %2470 = vmatpush3.msra.mxu0 %v2943_v14 }
0x2237   :  { %2485 = vmatprep.subr.mxu0 %v1105_v22 }
0x22ef   :  { %v1686_v53 = vpop.f32.mrf.mxu0 }
0x22f0   :  { %v1690_v54 = vadd.f32 %v1686_v53, %v2975_v23 }
0x22f1   :  { %v2451_v55 = vpop.f32.mrf.mxu0 }
0x22f2   :  { %v2177_v56 = vmul.f32 -1.442695, %v1690_v54 }
0x22f4   :  { %2596 = vpow2.f32 %v2177_v56 }
0x22f5   :  { %2598 = vtanh.f32 %v1690_v54 }
0x2301   :  { %v2597_v57 = vpop.eup %2596 }
0x2302   :  { %v1695_v58 = vadd.f32 1.0, %v2597_v57  ;;  %v2599_v11 = vpop.eup %2598 }
0x2304   :  { %2600 = vrcp.f32 %v1695_v58 }
0x2311   :  { %v2601_v59 = vpop.eup %2600 }
0x2312   :  { %v1698_v60 = vsel %vm2767_vm4, %v2599_v11, %v2601_v59 }
0x2313   :  { %1704 = vrot.lane.b32.xlu1 %v1698_v60, %s2630_s3  ;;  %v1702_v0 = vmul.f32 %v1700_v63, %v1698_v60 }
0x2385   :  { %v1705_v61 = vpop.permute.xlu1 %1704 }
0x2386   :  { %v1707_v62 = vmul.f32 %v1705_v61, %v1698_v60 }
0x2388   :  { %1709 = vrot.lane.b32.xlu0 %v1707_v62, %s2631_s13 }
0x23fa   :  { %v1710_v42 = vpop.permute.xlu0 %1709 }
0x23fb   :  { %v1712_v1 = vadd.f32 %v1710_v42, %v1702_v0 }
0x23fd   :  { %2602 = vtanh.f32 %v1712_v1  ;;  %v1807_v20 = vrot.slane %v1712_v1, 6 }
0x240a   :  { %v2603_v4 = vpop.eup %2602 }
0x240b   :  { %1715 = vrot.lane.b32.xlu1 %v2603_v4, %s2630_s3 }
0x247d   :  { %v1716_v2 = vpop.permute.xlu1 %1715 }
0x247e   :  { %v3065_v5 = vmul.f32 %v1716_v2, %v1698_v60 }
0x2480   :  { %1720 = vrot.lane.b32.xlu0 %v3065_v5, %s2631_s13 }
0x24f2   :  { %v1721_v9 = vpop.permute.xlu0 %1720 }
0x24f3   :  { %2461 = vmatmul.mubr.msk.f32.vlgmr.msra.gmra.mxu1 %vm145_vm5, %v1721_v9  ;;  %v1104_v9 = vld [vmem:[%s3142_s9 + $0x10] sm:$0xff] }
0x24f4   :  { %2475 = vmatpush3.msra.mxu1 %v2923_v7  ;;  %2482 = vmatprep.mubr.msk.f32.mxu1 %vm2629_vm1, %v2628_v3 }
0x24f5   :  { %2476 = vmatprep.subr.mxu1 %v2628_v3 }
0x24f6   :  { %2477 = vmatpush3.msra.mxu1 %v2930_v12 }
0x24f7   :  { %2478 = vmatprep.subr.mxu1 %v2628_v3 }
0x24f8   :  { %2479 = vmatpush3.msra.mxu1 %v2936_v8 }
0x24f9   :  { %2480 = vmatprep.subr.mxu1 %v2628_v3 }
0x24fa   :  { %2481 = vmatpush3.msra.mxu1 %v2943_v14 }
0x25b3   :  { %v1790_v6 = vpop.f32.mrf.mxu1 }
0x25b4   :  { %v1795_v10 = vrot.slane %v1790_v6, 6  ;;  %v1102_v6 = vld [vmem:[%s3142_s9] sm:$0xff] }
0x25b5   :  { %v2462_v15 = vpop.f32.mrf.mxu1 }
0x25b6   :  { %v1797_v7 = vadd.f32 %v1795_v10, %v2975_v23 }
0x25b8   :  { %v2179_v16 = vmul.f32 -1.442695, %v1797_v7 }
0x25ba   :  { %2604 = vpow2.f32 %v2179_v16 }
0x25bb   :  { %2606 = vtanh.f32 %v1797_v7 }
0x25c7   :  { %v2605_v17 = vpop.eup %2604 }
0x25c8   :  { %v1802_v18 = vadd.f32 1.0, %v2605_v17  ;;  %v2607_v12 = vpop.eup %2606 }
0x25ca   :  { %2608 = vrcp.f32 %v1802_v18  ;;  %v2184_v18 = vld [vmem:[%s3143_s10] ss:$0 sm:$0xff] }
0x25d7   :  { %v2609_v19 = vpop.eup %2608 }
0x25d8   :  { %v1805_v8 = vsel %vm2767_vm4, %v2607_v12, %v2609_v19 }
0x25d9   :  { %1811 = vrot.lane.b32.xlu1 %v1805_v8, %s2630_s3  ;;  %v1809_v21 = vmul.f32 %v1807_v20, %v1805_v8 }
0x264b   :  { %v1812_v3 = vpop.permute.xlu1 %1811 }
0x264c   :  { %v1814_v14 = vmul.f32 %v1812_v3, %v1805_v8 }
0x264e   :  { %1816 = vrot.lane.b32.xlu0 %v1814_v14, %s2631_s13 }
0x26c0   :  { %v1817_v24 = vpop.permute.xlu0 %1816 }
0x26c1   :  { %v1819_v26 = vadd.f32 %v1817_v24, %v1809_v21 }
0x26c3   :  { %2610 = vtanh.f32 %v1819_v26  ;;  %v1915_v44 = vrot.slane %v1819_v26, 6 }
0x26d0   :  { %v2611_v27 = vpop.eup %2610 }
0x26d1   :  { %1822 = vrot.lane.b32.xlu1 %v2611_v27, %s2630_s3 }
0x2743   :  { %v1823_v28 = vpop.permute.xlu1 %1822 }
0x2744   :  { %v1825_v29 = vmul.f32 %v1823_v28, %v1805_v8 }
0x2746   :  { %v1827_v30 = vrot.slane %v1825_v29, 2  ;;  %v2045_v50 = vsel %vm996_vm6, %v3065_v5, %v1825_v29 }
0x2748   :  { %1828 = vrot.lane.b32.xlu0 %v1827_v30, %s2631_s13 }
0x27ba   :  { %v1829_v31 = vpop.permute.xlu0 %1828 }
0x27bb   :  { %2472 = vmatmul.mubr.msk.f32.vlgmr.msra.gmra.mxu0 %vm145_vm5, %v1829_v31 }
0x27bc   :  { %2486 = vmatpush3.msra.mxu0 %v1105_v22 }
0x27bd   :  { %2487 = vmatprep.subr.mxu0 %v1104_v9 }
0x27be   :  { %2488 = vmatpush3.msra.mxu0 %v1104_v9 }
0x287b   :  { %v1898_v32 = vpop.f32.mrf.mxu0 }
0x287c   :  { %v1903_v33 = vrot.slane %v1898_v32, 4 }
0x287d   :  { %v2473_v34 = vpop.f32.mrf.mxu0 }
0x287e   :  { %v1905_v35 = vadd.f32 %v1903_v33, %v2975_v23 }
0x2880   :  { %v2181_v36 = vmul.f32 -1.442695, %v1905_v35 }
0x2882   :  { %2612 = vpow2.f32 %v2181_v36 }
0x2883   :  { %2614 = vtanh.f32 %v1905_v35 }
0x288f   :  { %v2613_v13 = vpop.eup %2612 }
0x2890   :  { %v1910_v37 = vadd.f32 1.0, %v2613_v13  ;;  %v2615_v38 = vpop.eup %2614 }
0x2892   :  { %2616 = vrcp.f32 %v1910_v37 }
0x289f   :  { %v2617_v39 = vpop.eup %2616 }
0x28a0   :  { %v1913_v40 = vsel %vm2767_vm4, %v2615_v38, %v2617_v39 }
0x28a1   :  { %1919 = vrot.lane.b32.xlu1 %v1913_v40, %s2630_s3  ;;  %v1917_v45 = vmul.f32 %v1915_v44, %v1913_v40 }
0x2913   :  { %v1920_v41 = vpop.permute.xlu1 %1919 }
0x2914   :  { %v1922_v43 = vmul.f32 %v1920_v41, %v1913_v40 }
0x2916   :  { %1924 = vrot.lane.b32.xlu0 %v1922_v43, %s2631_s13 }
0x2988   :  { %v1925_v25 = vpop.permute.xlu0 %1924 }
0x2989   :  { %v1927_v46 = vadd.f32 %v1925_v25, %v1917_v45 }
0x298b   :  { %2618 = vtanh.f32 %v1927_v46 }
0x2998   :  { %v2619_v47 = vpop.eup %2618 }
0x2999   :  { %1930 = vrot.lane.b32.xlu1 %v2619_v47, %s2630_s3 }
0x2a0b   :  { %v1931_v48 = vpop.permute.xlu1 %1930 }
0x2a0c   :  { %v1933_v49 = vmul.f32 %v1931_v48, %v1913_v40 }
0x2a0e   :  { %v1935_v52 = vrot.slane %v1933_v49, 4  ;;  %v2046_v53 = vsel %vm998_vm7, %v2045_v50, %v1933_v49 }
0x2a10   :  { %1936 = vrot.lane.b32.xlu0 %v1935_v52, %s2631_s13 }
0x2a82   :  { %v1937_v54 = vpop.permute.xlu0 %1936 }
0x2a83   :  { %2483 = vmatmul.mubr.msk.f32.vlgmr.msra.gmra.mxu1 %vm145_vm5, %v1937_v54 }
0x2b43   :  { %v2006_v55 = vpop.f32.mrf.mxu1 }
0x2b44   :  { %v2011_v56 = vrot.slane %v2006_v55, 2 }
0x2b45   :  { %v2484_v57 = vpop.f32.mrf.mxu1 }
0x2b46   :  { %v2013_v58 = vadd.f32 %v2011_v56, %v2975_v23  ;;  %v2023_v23 = vrot.slane %v1927_v46, 6 }
0x2b48   :  { %v2183_v11 = vmul.f32 -1.442695, %v2013_v58 }
0x2b4a   :  { %2620 = vpow2.f32 %v2183_v11 }
0x2b4b   :  { %2622 = vtanh.f32 %v2013_v58 }
0x2b57   :  { %v2621_v59 = vpop.eup %2620 }
0x2b58   :  { %v2018_v60 = vadd.f32 1.0, %v2621_v59  ;;  %v2623_v61 = vpop.eup %2622 }
0x2b5a   :  { %2624 = vrcp.f32 %v2018_v60 }
0x2b67   :  { %v2625_v62 = vpop.eup %2624 }
0x2b68   :  { %v2021_v63 = vsel %vm2767_vm4, %v2623_v61, %v2625_v62 }
0x2b69   :  { %2027 = vrot.lane.b32.xlu1 %v2021_v63, %s2630_s3  ;;  %v2025_v1 = vmul.f32 %v2023_v23, %v2021_v63 }
0x2bdb   :  { %v2028_v0 = vpop.permute.xlu1 %2027 }
0x2bdc   :  { %v2030_v42 = vmul.f32 %v2028_v0, %v2021_v63 }
0x2bde   :  { %2032 = vrot.lane.b32.xlu0 %v2030_v42, %s2631_s13 }
0x2be2   :  { %2056 = vrot.lane.b32.xlu0 %v3046_v51, %s2631_s13  ;;  %v1103_v51 = vld [vmem:[%s3142_s9 + $0x8] sm:$0xff] }
0x2be3   :  { %2489 = vmatprep.subr.mxu0 %v1103_v51 }
0x2be4   :  { %2490 = vmatpush3.msra.mxu0 %v1103_v51 }
0x2be5   :  { %2491 = vmatprep.subr.mxu0 %v1102_v6 }
0x2be6   :  { %2492 = vmatpush3.msra.mxu0 %v1102_v6 }
0x2c50   :  { %v2033_v4 = vpop.permute.xlu0 %2032 }
0x2c51   :  { %v2035_v2 = vadd.f32 %v2033_v4, %v2025_v1 }
0x2c53   :  { %2626 = vtanh.f32 %v2035_v2 }
0x2c54   :  { %v2057_v5 = vpop.permute.xlu0 %2056 }
0x2c55   :  { %2493 = vmatprep.mubr.msk.f32.mxu0 %vm145_vm5, %v2057_v5 }
0x2c60   :  { %v2627_v10 = vpop.eup %2626 }
0x2c61   :  { %2038 = vrot.lane.b32.xlu1 %v2627_v10, %s2630_s3 }
0x2cd3   :  { %v2039_v15 = vpop.permute.xlu1 %2038 }
0x2cd4   :  { %v2041_v7 = vmul.f32 %v2039_v15, %v2021_v63 }
0x2cd6   :  { %v2047_v16 = vsel %vm1000_vm8, %v2046_v53, %v2041_v7 }
0x2cd7   :  { %2058 = vrot.lane.b32.xlu1 %v2047_v16, %s2631_s13 }
0x2d49   :  { %v2059_v17 = vpop.permute.xlu1 %2058 }
0x2d4a   :  { %2494 = vmatmul.mubr.msk.f32.vlgmr.msra.gmra.mxu0 %vm145_vm5, %v2059_v17 }
0x2e0a   :  { %v2495_v12 = vpop.f32.mrf.mxu0 }
0x2e0b   :  { %v2136_v19 = vadd.f32 %v2495_v12, %v2184_v18 }
0x2e0c   :  { %v2130_v8 = vpop.f32.mrf.mxu0 }
0x2e0d   :  { %2140 = vst.msk [vmem:[%s3144_s11 + $0x8] sm:$0xff] %vm58_vm0, %v2136_v19  ;;  %v2131_v3 = vadd.f32 %v2184_v18, %v2130_v8 }
0x2e0f   :  { %2139 = vst.msk [vmem:[%s3144_s11] sm:$0xff] %vm58_vm0, %v2131_v3 }

</bundles_post_ra>
